<compile_context>
chip_gen: v5e
topology: v5e:2x2
jax: 0.10.0
libtpu: 0.0.40
codegen_flags: <defaults>
</compile_context>

<pallas_src>
import functools

import jax
import jax.numpy as jnp
from jax.experimental import pallas as pl
from jax.experimental.pallas import tpu as pltpu

# Hyperparameters implied by the module (undefined globals in the PyTorch source);
# chosen small and TPU-friendly (feature dims are full-array, VMEM-resident blocks).
payloadBits_per_OFDM = 64          # -> input dim = 128
n_hidden_1 = 256
n_hidden_2 = 128
n_hidden_3 = 128
n_output = 16

IN_DIM = payloadBits_per_OFDM * 2


def mlp_kernel(x_ref,
               w1_ref, b1_ref,
               w2_ref, b2_ref,
               w3_ref, b3_ref,
               w4_ref, b4_ref,
               o_ref):
    """Fused 4-layer MLP on one (batch_tile, IN_DIM) tile; weights resident in VMEM.

    Matmuls run in the weights' dtype (bf16 by default -> full-rate MXU on v6e/v7x) and
    accumulate in f32 on the MXU; bias add / ReLU / sigmoid stay in f32 on the VPU/EUP.
    x arrives as f32 and is cast here (cheaper than a separate wrapper-side astype pass).
    """
    mm_dtype = w1_ref.dtype
    x = x_ref[...].astype(mm_dtype)

    h = jnp.dot(x, w1_ref[...], preferred_element_type=jnp.float32) + b1_ref[...]
    h = jnp.maximum(h, 0.0).astype(mm_dtype)

    h = jnp.dot(h, w2_ref[...], preferred_element_type=jnp.float32) + b2_ref[...]
    h = jnp.maximum(h, 0.0).astype(mm_dtype)

    h = jnp.dot(h, w3_ref[...], preferred_element_type=jnp.float32) + b3_ref[...]
    h = jnp.maximum(h, 0.0).astype(mm_dtype)

    logits = jnp.dot(h, w4_ref[...], preferred_element_type=jnp.float32) + b4_ref[...]
    # Exact sigmoid: mem-bound kernel, the exact divide is free.  Output is n_output (16)
    # lanes wide and stored directly (masked store; far cheaper than a padded f32 writeback).
    o_ref[...] = 1.0 / (1.0 + jnp.exp(-logits))


def prepare_params(params, matmul_dtype=jnp.bfloat16):
    """One-time preparation, hoisted out of the forward path: cast weights to the matmul
    dtype (bf16 by default).  Biases stay f32 (added to the f32 MXU accumulator)."""
    prepped = {}
    for idx in range(1, 5):
        prepped[f"w{idx}"] = params[f"w{idx}"].astype(matmul_dtype)
        prepped[f"b{idx}"] = params[f"b{idx}"].astype(jnp.float32)
    return prepped


def _pick_batch_tile(B, requested):
    """Largest tile <= requested that fits the batch while keeping >= 2 grid steps when the
    batch allows it (v7x shares the 'parallel' grid axis across its 2 TensorCores; >= 2
    steps also lets the x-tile DMA for step i+1 hide under step i on v5e/v6e)."""
    tile = min(requested, B)
    if B >= 256:
        half = -(-(B // 2) // 8) * 8          # half the batch, rounded up to a multiple of 8
        tile = min(tile, max(128, half))
    return max(tile, 1)


@functools.partial(jax.jit, static_argnames=("batch_tile",))
def neural_net_forward(x, params, *, batch_tile=512):
    """x: (B, IN_DIM) float32.  params: output of prepare_params (weights (in, out) in the
    matmul dtype, biases (1, out) f32).  Returns (B, n_output) float32 sigmoid outputs."""
    B = x.shape[0]
    tile = _pick_batch_tile(B, batch_tile)
    p = params

    def resident(arr):
        # Full-array block, constant index_map: DMA'd once, stays in VMEM for every step.
        nd = arr.ndim
        return pl.BlockSpec(arr.shape, lambda i, _nd=nd: (0,) * _nd)

    # Note: if B is not a multiple of `tile`, the last grid step reads padding rows of x;
    # each output row depends only on its own input row and padded rows are masked on
    # store, so this is benign.
    return pl.pallas_call(
        mlp_kernel,
        out_shape=jax.ShapeDtypeStruct((B, n_output), jnp.float32),
        grid_spec=pl.GridSpec(
            grid=(pl.cdiv(B, tile),),
            in_specs=[
                pl.BlockSpec((tile, IN_DIM), lambda i: (i, 0)),   # x tiled over batch
                resident(p["w1"]), resident(p["b1"]),
                resident(p["w2"]), resident(p["b2"]),
                resident(p["w3"]), resident(p["b3"]),
                resident(p["w4"]), resident(p["b4"]),
            ],
            # (tile, n_output) is legal: 16 == full last dim.  No padded writeback.
            out_specs=pl.BlockSpec((tile, n_output), lambda i: (i, 0)),
        ),
        compiler_params=pltpu.CompilerParams(
            dimension_semantics=("parallel",)),
    )(x, p["w1"], p["b1"], p["w2"], p["b2"], p["w3"], p["b3"], p["w4"], p["b4"])


def init_params(key):
    """Deterministic init matching PyTorch nn.Linear default: U(-1/sqrt(fan_in), 1/sqrt(fan_in))."""
    dims = [(IN_DIM, n_hidden_1), (n_hidden_1, n_hidden_2),
            (n_hidden_2, n_hidden_3), (n_hidden_3, n_output)]
    params = {}
    for idx, (fan_in, fan_out) in enumerate(dims, start=1):
        key, kw, kb = jax.random.split(key, 3)
        bound = 1.0 / jnp.sqrt(fan_in)
        params[f"w{idx}"] = jax.random.uniform(
            kw, (fan_in, fan_out), jnp.float32, -bound, bound)
        params[f"b{idx}"] = jax.random.uniform(
            kb, (1, fan_out), jnp.float32, -bound, bound)
    return params


def reference_forward(x, p):
    h = jnp.maximum(x @ p["w1"] + p["b1"], 0.0)
    h = jnp.maximum(h @ p["w2"] + p["b2"], 0.0)
    h = jnp.maximum(h @ p["w3"] + p["b3"], 0.0)
    return jax.nn.sigmoid(h @ p["w4"] + p["b4"])


if __name__ == "__main__":
    key = jax.random.PRNGKey(0)
    key, kx = jax.random.split(key)
    B = 256                      # small demo batch -> tile picker gives 2 x 128-row parallel steps
    x = jax.random.normal(kx, (B, IN_DIM), jnp.float32)
    params = init_params(key)

    ref = reference_forward(x, params)

    # f32-matmul path: check against the pure-JAX reference (exact sigmoid in-kernel).
    out_f32 = jax.block_until_ready(
        neural_net_forward(x, prepare_params(params, jnp.float32)))
    assert out_f32.shape == (B, n_output)
    assert jnp.allclose(out_f32, ref, atol=1e-2, rtol=0), \
        float(jnp.abs(out_f32 - ref).max())

    # Default bf16-matmul path (full-rate MXU on v6e/v7x): looser tolerance for bf16 rounding.
    out_bf16 = jax.block_until_ready(
        neural_net_forward(x, prepare_params(params)))
    assert out_bf16.shape == (B, n_output)
    assert jnp.allclose(out_bf16, ref, atol=3e-2, rtol=0), \
        float(jnp.abs(out_bf16 - ref).max())

    print("KERNEL_OK")
</pallas_src>

<mosaic_0001>
module attributes {stable_mosaic.version = 11 : i64} {
  func.func @mlp_kernel(%arg0: i32, %arg1: memref<128x128xf32, #tpu.memory_space<vmem>>, %arg2: memref<128x256xf32, #tpu.memory_space<vmem>>, %arg3: memref<1x256xf32, #tpu.memory_space<vmem>>, %arg4: memref<256x128xf32, #tpu.memory_space<vmem>>, %arg5: memref<1x128xf32, #tpu.memory_space<vmem>>, %arg6: memref<128x128xf32, #tpu.memory_space<vmem>>, %arg7: memref<1x128xf32, #tpu.memory_space<vmem>>, %arg8: memref<128x16xf32, #tpu.memory_space<vmem>>, %arg9: memref<1x16xf32, #tpu.memory_space<vmem>>, %arg10: memref<128x16xf32, #tpu.memory_space<vmem>>) attributes {dimension_semantics = [#tpu.dimension_semantics<parallel>], iteration_bounds = array<i64: 2>, scalar_prefetch = 0 : i64, scratch_operands = 0 : i64, tpu.core_type = #tpu.core_type<tc>, window_params = [{transform_indices = @transform_0, window_bounds = array<i64: 128, 128>}, {pipeline_mode = #tpu.pipeline_mode<synchronous>, transform_indices = @transform_1, window_bounds = array<i64: 128, 256>}, {pipeline_mode = #tpu.pipeline_mode<synchronous>, transform_indices = @transform_2, window_bounds = array<i64: 1, 256>}, {pipeline_mode = #tpu.pipeline_mode<synchronous>, transform_indices = @transform_3, window_bounds = array<i64: 256, 128>}, {pipeline_mode = #tpu.pipeline_mode<synchronous>, transform_indices = @transform_4, window_bounds = array<i64: 1, 128>}, {pipeline_mode = #tpu.pipeline_mode<synchronous>, transform_indices = @transform_5, window_bounds = array<i64: 128, 128>}, {pipeline_mode = #tpu.pipeline_mode<synchronous>, transform_indices = @transform_6, window_bounds = array<i64: 1, 128>}, {pipeline_mode = #tpu.pipeline_mode<synchronous>, transform_indices = @transform_7, window_bounds = array<i64: 128, 16>}, {pipeline_mode = #tpu.pipeline_mode<synchronous>, transform_indices = @transform_8, window_bounds = array<i64: 1, 16>}, {transform_indices = @transform_9, window_bounds = array<i64: 128, 16>}]} {
    %c0 = arith.constant 0 : index
    %c0_0 = arith.constant 0 : index
    %0 = vector.load %arg1[%c0, %c0_0] : memref<128x128xf32, #tpu.memory_space<vmem>>, vector<128x128xf32>
    %c0_1 = arith.constant 0 : index
    %c0_2 = arith.constant 0 : index
    %1 = vector.load %arg2[%c0_1, %c0_2] : memref<128x256xf32, #tpu.memory_space<vmem>>, vector<128x256xf32>
    %cst = arith.constant dense<0.000000e+00> : vector<128x256xf32>
    %2 = tpu.matmul %0, %1, %cst {dimension_numbers = #tpu.dot_dimension_numbers<[1], [0], [0], [1], [0, 0, 1, 1], [], []>} : vector<128x128xf32>, vector<128x256xf32>, vector<128x256xf32> -> vector<128x256xf32>
    %c0_3 = arith.constant 0 : index
    %c0_4 = arith.constant 0 : index
    %3 = vector.load %arg3[%c0_3, %c0_4] : memref<1x256xf32, #tpu.memory_space<vmem>>, vector<1x256xf32>
    %4 = vector.broadcast %3 : vector<1x256xf32> to vector<128x256xf32>
    %5 = arith.addf %2, %4 : vector<128x256xf32>
    %cst_5 = arith.constant 0.000000e+00 : f32
    %6 = vector.broadcast %cst_5 : f32 to vector<128x256xf32>
    %7 = arith.maximumf %5, %6 : vector<128x256xf32>
    %c0_6 = arith.constant 0 : index
    %c0_7 = arith.constant 0 : index
    %8 = vector.load %arg4[%c0_6, %c0_7] : memref<256x128xf32, #tpu.memory_space<vmem>>, vector<256x128xf32>
    %cst_8 = arith.constant dense<0.000000e+00> : vector<128x128xf32>
    %9 = tpu.matmul %7, %8, %cst_8 {dimension_numbers = #tpu.dot_dimension_numbers<[1], [0], [0], [1], [0, 0, 1, 1], [], []>} : vector<128x256xf32>, vector<256x128xf32>, vector<128x128xf32> -> vector<128x128xf32>
    %c0_9 = arith.constant 0 : index
    %c0_10 = arith.constant 0 : index
    %10 = vector.load %arg5[%c0_9, %c0_10] : memref<1x128xf32, #tpu.memory_space<vmem>>, vector<1x128xf32>
    %11 = vector.broadcast %10 : vector<1x128xf32> to vector<128x128xf32>
    %12 = arith.addf %9, %11 : vector<128x128xf32>
    %cst_11 = arith.constant 0.000000e+00 : f32
    %13 = vector.broadcast %cst_11 : f32 to vector<128x128xf32>
    %14 = arith.maximumf %12, %13 : vector<128x128xf32>
    %c0_12 = arith.constant 0 : index
    %c0_13 = arith.constant 0 : index
    %15 = vector.load %arg6[%c0_12, %c0_13] : memref<128x128xf32, #tpu.memory_space<vmem>>, vector<128x128xf32>
    %cst_14 = arith.constant dense<0.000000e+00> : vector<128x128xf32>
    %16 = tpu.matmul %14, %15, %cst_14 {dimension_numbers = #tpu.dot_dimension_numbers<[1], [0], [0], [1], [0, 0, 1, 1], [], []>} : vector<128x128xf32>, vector<128x128xf32>, vector<128x128xf32> -> vector<128x128xf32>
    %c0_15 = arith.constant 0 : index
    %c0_16 = arith.constant 0 : index
    %17 = vector.load %arg7[%c0_15, %c0_16] : memref<1x128xf32, #tpu.memory_space<vmem>>, vector<1x128xf32>
    %18 = vector.broadcast %17 : vector<1x128xf32> to vector<128x128xf32>
    %19 = arith.addf %16, %18 : vector<128x128xf32>
    %cst_17 = arith.constant 0.000000e+00 : f32
    %20 = vector.broadcast %cst_17 : f32 to vector<128x128xf32>
    %21 = arith.maximumf %19, %20 : vector<128x128xf32>
    %c0_18 = arith.constant 0 : index
    %c0_19 = arith.constant 0 : index
    %22 = vector.load %arg8[%c0_18, %c0_19] : memref<128x16xf32, #tpu.memory_space<vmem>>, vector<128x16xf32>
    %cst_20 = arith.constant dense<0.000000e+00> : vector<128x16xf32>
    %23 = tpu.matmul %21, %22, %cst_20 {dimension_numbers = #tpu.dot_dimension_numbers<[1], [0], [0], [1], [0, 0, 1, 1], [], []>} : vector<128x128xf32>, vector<128x16xf32>, vector<128x16xf32> -> vector<128x16xf32>
    %c0_21 = arith.constant 0 : index
    %c0_22 = arith.constant 0 : index
    %24 = vector.load %arg9[%c0_21, %c0_22] : memref<1x16xf32, #tpu.memory_space<vmem>>, vector<1x16xf32>
    %25 = vector.broadcast %24 : vector<1x16xf32> to vector<128x16xf32>
    %26 = arith.addf %23, %25 : vector<128x16xf32>
    %cst_23 = arith.constant 0.000000e+00 : f32
    %27 = vector.broadcast %cst_23 : f32 to vector<128x16xf32>
    %28 = arith.subf %27, %26 : vector<128x16xf32>
    %29 = math.exp %28 : vector<128x16xf32>
    %cst_24 = arith.constant 1.000000e+00 : f32
    %30 = vector.broadcast %cst_24 : f32 to vector<128x16xf32>
    %31 = arith.addf %30, %29 : vector<128x16xf32>
    %cst_25 = arith.constant 1.000000e+00 : f32
    %32 = vector.broadcast %cst_25 : f32 to vector<128x16xf32>
    %33 = arith.divf %32, %31 : vector<128x16xf32>
    %c0_26 = arith.constant 0 : index
    %c0_27 = arith.constant 0 : index
    %34 = vector.load %arg10[%c0_26, %c0_27] : memref<128x16xf32, #tpu.memory_space<vmem>>, vector<128x16xf32>
    tpu.vector_store %arg10[%c0_26, %c0_27], %33 {strides = array<i32>} : memref<128x16xf32, #tpu.memory_space<vmem>>, vector<128x16xf32>,
    return
  }
  func.func @transform_0(%arg0: i32) -> (i32, i32) {
    %c0_i32 = arith.constant 0 : i32
    %c0_i32_0 = arith.constant 0 : i32
    return %arg0, %c0_i32 : i32, i32
  }
  func.func @transform_1(%arg0: i32) -> (i32, i32) {
    %c0_i32 = arith.constant 0 : i32
    %c0_i32_0 = arith.constant 0 : i32
    %c0_i32_1 = arith.constant 0 : i32
    return %c0_i32, %c0_i32_0 : i32, i32
  }
  func.func @transform_2(%arg0: i32) -> (i32, i32) {
    %c0_i32 = arith.constant 0 : i32
    %c0_i32_0 = arith.constant 0 : i32
    %c0_i32_1 = arith.constant 0 : i32
    return %c0_i32, %c0_i32_0 : i32, i32
  }
  func.func @transform_3(%arg0: i32) -> (i32, i32) {
    %c0_i32 = arith.constant 0 : i32
    %c0_i32_0 = arith.constant 0 : i32
    %c0_i32_1 = arith.constant 0 : i32
    return %c0_i32, %c0_i32_0 : i32, i32
  }
  func.func @transform_4(%arg0: i32) -> (i32, i32) {
    %c0_i32 = arith.constant 0 : i32
    %c0_i32_0 = arith.constant 0 : i32
    %c0_i32_1 = arith.constant 0 : i32
    return %c0_i32, %c0_i32_0 : i32, i32
  }
  func.func @transform_5(%arg0: i32) -> (i32, i32) {
    %c0_i32 = arith.constant 0 : i32
    %c0_i32_0 = arith.constant 0 : i32
    %c0_i32_1 = arith.constant 0 : i32
    return %c0_i32, %c0_i32_0 : i32, i32
  }
  func.func @transform_6(%arg0: i32) -> (i32, i32) {
    %c0_i32 = arith.constant 0 : i32
    %c0_i32_0 = arith.constant 0 : i32
    %c0_i32_1 = arith.constant 0 : i32
    return %c0_i32, %c0_i32_0 : i32, i32
  }
  func.func @transform_7(%arg0: i32) -> (i32, i32) {
    %c0_i32 = arith.constant 0 : i32
    %c0_i32_0 = arith.constant 0 : i32
    %c0_i32_1 = arith.constant 0 : i32
    return %c0_i32, %c0_i32_0 : i32, i32
  }
  func.func @transform_8(%arg0: i32) -> (i32, i32) {
    %c0_i32 = arith.constant 0 : i32
    %c0_i32_0 = arith.constant 0 : i32
    %c0_i32_1 = arith.constant 0 : i32
    return %c0_i32, %c0_i32_0 : i32, i32
  }
  func.func @transform_9(%arg0: i32) -> (i32, i32) {
    %c0_i32 = arith.constant 0 : i32
    %c0_i32_0 = arith.constant 0 : i32
    return %arg0, %c0_i32 : i32, i32
  }
}

</mosaic_0001>

<bundles_post_ra>
// kernel: neural_net_forward.1
= control target key start
LH: loop header
LB: loop body
LE: loop exit
PB: predicated region body
PF: predicated region fallthrough
CT: control target
= control target key end

     0   :  { %s2095_s0 = inlined_call_operand.hbm [shape: f32[256,128], index: 0, kind: input, shape index: {}]   ;;  %s2096_s1 = inlined_call_operand.hbm [shape: f32[128,256], index: 1, kind: input, shape index: {}]   ;;  %s2097_s2 = inlined_call_operand.vmem [shape: f32[1,256], index: 2, kind: input, shape index: {}]   ;;  %s2098_s3 = inlined_call_operand.hbm [shape: f32[256,128], index: 3, kind: input, shape index: {}]   ;;  %s2099_s4 = inlined_call_operand.vmem [shape: f32[1,128], index: 4, kind: input, shape index: {}]   ;;  %s2100_s5 = inlined_call_operand.vmem [shape: f32[128,128], index: 5, kind: input, shape index: {}]   ;;  %s2101_s6 = inlined_call_operand.vmem [shape: f32[1,128], index: 6, kind: input, shape index: {}]   ;;  %s2102_s7 = inlined_call_operand.vmem [shape: f32[128,16], index: 7, kind: input, shape index: {}]   ;;  %s2103_s8 = inlined_call_operand.vmem [shape: f32[1,16], index: 8, kind: input, shape index: {}]   ;;  %s2104_s9 = inlined_call_operand.vmem [shape: f32[256,16], index: 9, kind: output, shape index: {}]  }
   0x1   :  { %2108 = sst [smem:[#allocation9_spill]] %s2096_s1 }
   0x2   :  { %14 = vsyncpa [#allocation3], 0 }
   0x3   :  { %16 = vsyncpa [#allocation3 + $0x1], 0 }
   0x4   :  { %17 = vsyncpa [#allocation5], 0  ;;  %s1748_s30 = smov 0   ;;  %s1750_s10 = smov 0  }
   0x5   :  { %s1752_s11 = smov 0   ;;  %s1754_s12 = smov 0  }
   0x6 LB: > { %s2105_s13 = sadd.s32 4294967295, %s1690_s12   ;;  %p43_p0 = scmp.ne.s32.totalorder %s1682_s10, %s1678_s30  ;;  %s1690_s12 = sphi %s1754_s12, %s2120_s12   ;;  %s1686_s11 = sphi %s1752_s11, %s2119_s11   ;;  %s1682_s10 = sphi %s1750_s10, %s2118_s10   ;;  %s1678_s30 = sphi %s1748_s30, %s2117_s30  }
   0x7   : > { %p1770_p1 = scmp.eq.s32.totalorder %s2105_s13, 0  ;;  %p1383_p2 = scmp.ge.s32.totalorder %s1690_s12, 1 }
   0x8   : > { %p248_p3 = scmp.lt.s32.totalorder %s1690_s12, 3  ;;  %s2111_s1 = sld [smem:[#allocation9_spill]] }
   0x9   : > { %p1778_p4 = por %p1770_p1, %p43_p0  ;;  %s1692_s20 = smov [#allocation4]  }
   0xa   : > { %p1785_p5 = pnand %p1383_p2, %p248_p3  ;;  %s261_s21 = sshll.u32 %s1692_s20, 4  ;;  %s262_s21 = int_to_ptr.vmem [resolvable:$true] %s261_s21 }
   0xb   : > { %s276_s24 = sshll.u32 %s2098_s3, 4  ;;  %s1693_s25 = smov 256   ;;  %s277_s24 = int_to_ptr.hbm [resolvable:$true] %s276_s24 }
   0xc   : > { %p1441_p6 = pneg %p1785_p5  ;;  %s1694_s26 = smov 16  }
   0xd   : > { %s1695_s27 = smov [#allocation6]   ;;  %s2106_s29 = smov 128  }
   0xe   : > { %s259_s18 = sshll.u32 %s2111_s1, 4  ;;  %p1442_p7 = pnand %p1441_p6, %p1770_p1  ;;  %s260_s18 = int_to_ptr.hbm [resolvable:$true] %s259_s18 }
   0xf   : > { %s278_s28 = sshll.u32 %s1695_s27, 4  ;;  %s2107_s30 = smov 8   ;;  %s279_s28 = int_to_ptr.vmem [resolvable:$true] %s278_s28 }
  0x10   : > { %1444 = dma.hbm_to_vmem [thread:$0]  (!%p1442_p7), %s260_s18, 4096, %s262_s21, [#allocation5], %s1693_s25, %s1693_s25, %s1694_s26  }
  0x11   : > { %1447 = dma.hbm_to_vmem [thread:$0]  (!%p1442_p7), %s277_s24, 4096, %s279_s28, [#allocation5], %s2106_s29, %s2106_s29, %s2107_s30  }
  0x12   : > { %s1800_s16 = sadd.s32 1, %s1690_s12   ;;  %s30_s20 = sadd.s32 1, %s1686_s11 }
  0x13   : > { %s27_s17 = ssub.s32 %s1690_s12, %s1800_s16  ;;  %p37_p9 = scmp.ne.s32.totalorder %s1686_s11, %s1682_s10 }
  0x14   : > { %p28_p8 = scmp.eq.s32.totalorder %s27_s17, 0  ;;  %p38_p10 = scmp.eq.s32.totalorder %s1690_s12, 0 }
  0x15   : > { %s307_s21 = sand.u32 1, %s1686_s11   ;;  %s1398_s22 = sshll.u32 %s1690_s12, 7 }
  0x16   : > { %s1809_s18 = scalar_select %p28_p8, %s1686_s11, %s30_s20  }
  0x17   : > { %p39_p11 = por %p38_p10, %p37_p9  ;;  %p1454_p12 = scmp.lt.s32.totalorder %s1690_s12, 2 }
  0x18   : > { %s1387_s23 = sshll.u32 %s307_s21, 7  ;;  %s316_s27 = scalar_lea.hbm %s2095_s0, %s1398_s22 }
  0x19   : > { %s317_s24 = sshll.u32 %s316_s27, 4  ;;  %s311_s28 = scalar_lea.vmem [#allocation2], %s1387_s23  ;;  %s318_s24 = int_to_ptr.hbm [resolvable:$true] %s317_s24 }
  0x1a   : > { %s319_s13 = sshll.u32 %s311_s28, 4  ;;  %p1817_p13 = pnand %p1454_p12, %p39_p11  ;;  %s320_s13 = int_to_ptr.vmem [resolvable:$true] %s319_s13 }
  0x1b   : > { %s308_s20 = scalar_lea.sflag [#allocation3], %s307_s21  ;;  %s1622_s29 = sshra.s32 %s318_s24, 4  ;;  %s1623_s29 = int_to_ptr.hbm [resolvable:$true] %s1622_s29 }
  0x1c   : > { %s1624_s30 = scalar_lea.hbm %s1623_s29, 128  ;;  %p1626_p2 = pneg %p1817_p13 }
  0x1d   : > { %p1625_p0 = scmp.ne.s32.totalorder %s1623_s29, %s1624_s30  ;;  %s1629_s23 = scalar_lea.hbm %s2095_s0, 256 }
  0x1e   : > { %p1630_p7 = scmp.lt.s32.totalorder %s1623_s29, %s2095_s0  ;;  %p1631_p8 = scmp.lt.s32.totalorder %s1629_s23, %s1624_s30 }
  0x1f   : > { %p1627_p3 = pnand %p1626_p2, %p1625_p0 }
  0x20   : > { %p1632_p9 = por %p1631_p8, %p1630_p7 }
  0x21   : > { %p1628_p6 = pneg %p1627_p3 }
  0x23   : > { %p1633_p10 = pnand %p1632_p9, %p1628_p6 }
  0x25   : > { %1636 = shalt.err (!%p1633_p10)
}
  0x26   : > { %s2114_s21 = smov 8   ;;  %s2115_s28 = smov 128  }
  0x27   : > { %1451 = dma.hbm_to_vmem [thread:$0]  (!%p1817_p13), %s318_s24, 2048, %s320_s13, %s308_s20, %s2115_s28, %s2115_s28, %s2114_s21  }
  0x28   : > { %331 = sbr.rel (%p1785_p5) target bundleno = 757 (0x2f5), region = 56  ;;  %s333_s22 = sand.u32 (!%p1785_p5), 1, %s1682_s10  }
  0x29   : > { %s1391_s25 = sshll.u32 (!%p1785_p5), %s333_s22, 7  ;;  %s334_s1 = scalar_lea.sflag (!%p1785_p5), [#allocation3], %s333_s22 }
  0x2a   : > { %s1837_s26 = scalar_lea.vmem (!%p1785_p5), [#allocation2], %s1391_s25 }
  0x2d   : > { %1669 = dma.done.wait (%p1778_p4), %s334_s1, 2048  }
  0x2e   : > { %1671 = vsyncadd (%p1778_p4), %s334_s1, 4294965248 }
  0x2f   : > { %1673 = dma.done.wait (%p1770_p1), [#allocation5], 8192  }
  0x30   : > { %1675 = vsyncadd (%p1770_p1), [#allocation5], 4294959104  ;;  %v436_v0 = vld [vmem:[#allocation4 + $0xf0] sm:$0xff]  ;;  %v434_v1 = vld [vmem:[#allocation4 + $0xe0] sm:$0xff]  ;;  %s2116_s19 = sadd.s32 4294967295, %s1690_s12   ;;  %vm1278_vm3 = vcmask 130048  }
  0x31   : > { %v437_v2 = vld [vmem:[#allocation4 + $0xf8] sm:$0xff]  ;;  %444 = vmatpush.msra.mxu0 %v436_v0  ;;  %v435_v3 = vld [vmem:[#allocation4 + $0xe8] sm:$0xff]  ;;  %v432_v4 = vld [vmem:[#allocation4 + $0xd0] sm:$0xff]  ;;  %1399 = vmatpush.msra.mxu2 %v436_v0  ;;  %s1394_s29 = sshll.u32 %s2116_s19, 4 }
  0x32   : > { %509 = vmatpush.msra.mxu1 %v437_v2  ;;  %v433_v5 = vld [vmem:[#allocation4 + $0xd8] sm:$0xff]  ;;  %1415 = vmatpush.msra.mxu3 %v437_v2  ;;  %v430_v6 = vld [vmem:[#allocation4 + $0xc0] sm:$0xff]  ;;  %v431_v7 = vld [vmem:[#allocation4 + $0xc8] sm:$0xff]  ;;  %p385_p1 = scmp.lt.s32.totalorder %s1394_s29, 31 }
  0x33   : > { %445 = vmatpush.msra.mxu0 %v434_v1  ;;  %1400 = vmatpush.msra.mxu2 %v434_v1  ;;  %v428_v8 = vld [vmem:[#allocation4 + $0xb0] sm:$0xff]  ;;  %v429_v9 = vld [vmem:[#allocation4 + $0xb8] sm:$0xff]  ;;  %v426_v10 = vld [vmem:[#allocation4 + $0xa0] sm:$0xff] }
  0x34   : > { %510 = vmatpush.msra.mxu1 %v435_v3  ;;  %1416 = vmatpush.msra.mxu3 %v435_v3  ;;  %v427_v11 = vld [vmem:[#allocation4 + $0xa8] sm:$0xff]  ;;  %v424_v12 = vld [vmem:[#allocation4 + $0x90] sm:$0xff]  ;;  %v425_v13 = vld [vmem:[#allocation4 + $0x98] sm:$0xff]  ;;  %s2122_s29 = smov (!%p385_p1, %s1394_s29), 31 }
  0x35   : > { %446 = vmatpush.msra.mxu0 %v432_v4  ;;  %1401 = vmatpush.msra.mxu2 %v432_v4  ;;  %v422_v14 = vld [vmem:[#allocation4 + $0x80] sm:$0xff]  ;;  %v423_v15 = vld [vmem:[#allocation4 + $0x88] sm:$0xff]  ;;  %v420_v16 = vld [vmem:[#allocation4 + $0x70] sm:$0xff]  ;;  %s1395_s12 = sshll.u32 %s2122_s29, 3 }
  0x36   : > { %511 = vmatpush.msra.mxu1 %v433_v5  ;;  %1417 = vmatpush.msra.mxu3 %v433_v5  ;;  %v421_v17 = vld [vmem:[#allocation4 + $0x78] sm:$0xff]  ;;  %v418_v18 = vld [vmem:[#allocation4 + $0x60] sm:$0xff]  ;;  %v419_v19 = vld [vmem:[#allocation4 + $0x68] sm:$0xff]  ;;  %s2036_s17 = scalar_lea.vmem %s2104_s9, %s1395_s12 }
  0x37   : > { %447 = vmatpush.msra.mxu0 %v430_v6  ;;  %1402 = vmatpush.msra.mxu2 %v430_v6  ;;  %v416_v20 = vld [vmem:[#allocation4 + $0x50] sm:$0xff]  ;;  %v417_v21 = vld [vmem:[#allocation4 + $0x58] sm:$0xff]  ;;  %v414_v22 = vld [vmem:[#allocation4 + $0x40] sm:$0xff] }
  0x38   : > { %512 = vmatpush.msra.mxu1 %v431_v7  ;;  %1418 = vmatpush.msra.mxu3 %v431_v7  ;;  %v415_v23 = vld [vmem:[#allocation4 + $0x48] sm:$0xff]  ;;  %v412_v24 = vld [vmem:[#allocation4 + $0x30] sm:$0xff]  ;;  %v413_v25 = vld [vmem:[#allocation4 + $0x38] sm:$0xff] }
  0x39   : > { %448 = vmatpush.msra.mxu0 %v428_v8  ;;  %1403 = vmatpush.msra.mxu2 %v428_v8  ;;  %v410_v26 = vld [vmem:[#allocation4 + $0x20] sm:$0xff]  ;;  %v411_v27 = vld [vmem:[#allocation4 + $0x28] sm:$0xff]  ;;  %v408_v28 = vld [vmem:[#allocation4 + $0x10] sm:$0xff] }
  0x3a   : > { %513 = vmatpush.msra.mxu1 %v429_v9  ;;  %1419 = vmatpush.msra.mxu3 %v429_v9  ;;  %v409_v29 = vld [vmem:[#allocation4 + $0x18] sm:$0xff]  ;;  %v406_v30 = vld [vmem:[#allocation4] sm:$0xff]  ;;  %v407_v31 = vld [vmem:[#allocation4 + $0x8] sm:$0xff] }
  0x3b   : > { %449 = vmatpush.msra.mxu0 %v426_v10  ;;  %1404 = vmatpush.msra.mxu2 %v426_v10  ;;  %v390_v32 = vld [vmem:[%s1837_s26] sm:$0xff]  ;;  %v391_v33 = vld [vmem:[%s1837_s26 + $0x8] sm:$0xff]  ;;  %v392_v34 = vld [vmem:[%s1837_s26 + $0x10] sm:$0xff] }
  0x3c   : > { %514 = vmatpush.msra.mxu1 %v427_v11  ;;  %1420 = vmatpush.msra.mxu3 %v427_v11  ;;  %v393_v35 = vld [vmem:[%s1837_s26 + $0x18] sm:$0xff]  ;;  %v398_v36 = vld [vmem:[%s1837_s26 + $0x40] sm:$0xff]  ;;  %v620_v39 = vld [vmem:[#allocation6 + $0x70] sm:$0xff] }
  0x3d   : > { %450 = vmatpush.msra.mxu0 %v424_v12  ;;  %1405 = vmatpush.msra.mxu2 %v424_v12  ;;  %v621_v37 = vld [vmem:[#allocation6 + $0x78] sm:$0xff]  ;;  %v636_v40 = vld [vmem:[#allocation6 + $0xf0] sm:$0xff]  ;;  %v619_v41 = vld [vmem:[#allocation6 + $0x68] sm:$0xff] }
  0x3e   : > { %515 = vmatpush.msra.mxu1 %v425_v13  ;;  %1421 = vmatpush.msra.mxu3 %v425_v13  ;;  %v637_v38 = vld [vmem:[#allocation6 + $0xf8] sm:$0xff]  ;;  %v635_v42 = vld [vmem:[#allocation6 + $0xe8] sm:$0xff]  ;;  %v394_v43 = vld [vmem:[%s1837_s26 + $0x20] sm:$0xff] }
  0x3f   : > { %451 = vmatpush.msra.mxu0 %v422_v14  ;;  %1406 = vmatpush.msra.mxu2 %v422_v14  ;;  %v399_v44 = vld [vmem:[%s1837_s26 + $0x48] sm:$0xff]  ;;  %v618_v45 = vld [vmem:[#allocation6 + $0x60] sm:$0xff]  ;;  %v617_v47 = vld [vmem:[#allocation6 + $0x58] sm:$0xff] }
  0x40   : > { %516 = vmatpush.msra.mxu1 %v423_v15  ;;  %1422 = vmatpush.msra.mxu3 %v423_v15  ;;  %v634_v46 = vld [vmem:[#allocation6 + $0xe0] sm:$0xff]  ;;  %v633_v48 = vld [vmem:[#allocation6 + $0xd8] sm:$0xff]  ;;  %v616_v49 = vld [vmem:[#allocation6 + $0x50] sm:$0xff] }
  0x41   : > { %452 = vmatpush.msra.mxu0 %v420_v16  ;;  %1407 = vmatpush.msra.mxu2 %v420_v16  ;;  %v632_v50 = vld [vmem:[#allocation6 + $0xd0] sm:$0xff]  ;;  %v395_v51 = vld [vmem:[%s1837_s26 + $0x28] sm:$0xff]  ;;  %v614_v55 = vld [vmem:[#allocation6 + $0x40] sm:$0xff] }
  0x42   : > { %517 = vmatpush.msra.mxu1 %v421_v17  ;;  %1423 = vmatpush.msra.mxu3 %v421_v17  ;;  %v400_v52 = vld [vmem:[%s1837_s26 + $0x50] sm:$0xff]  ;;  %v615_v53 = vld [vmem:[#allocation6 + $0x48] sm:$0xff]  ;;  %v630_v56 = vld [vmem:[#allocation6 + $0xc0] sm:$0xff] }
  0x43   : > { %453 = vmatpush.msra.mxu0 %v418_v18  ;;  %1408 = vmatpush.msra.mxu2 %v418_v18  ;;  %v631_v54 = vld [vmem:[#allocation6 + $0xc8] sm:$0xff]  ;;  %v613_v57 = vld [vmem:[#allocation6 + $0x38] sm:$0xff]  ;;  %v396_v59 = vld [vmem:[%s1837_s26 + $0x30] sm:$0xff] }
  0x44   : > { %518 = vmatpush.msra.mxu1 %v419_v19  ;;  %1424 = vmatpush.msra.mxu3 %v419_v19  ;;  %v629_v58 = vld [vmem:[#allocation6 + $0xb8] sm:$0xff]  ;;  %v612_v61 = vld [vmem:[#allocation6 + $0x30] sm:$0xff]  ;;  %v611_v63 = vld [vmem:[#allocation6 + $0x28] sm:$0xff] }
  0x45   : > { %454 = vmatpush.msra.mxu0 %v416_v20  ;;  %1409 = vmatpush.msra.mxu2 %v416_v20  ;;  %v401_v60 = vld [vmem:[%s1837_s26 + $0x58] sm:$0xff]  ;;  %v628_v62 = vld [vmem:[#allocation6 + $0xb0] sm:$0xff]  ;;  %v627_v0 = vld [vmem:[#allocation6 + $0xa8] sm:$0xff] }
  0x46   : > { %519 = vmatpush.msra.mxu1 %v417_v21  ;;  %1425 = vmatpush.msra.mxu3 %v417_v21  ;;  %v610_v1 = vld [vmem:[#allocation6 + $0x20] sm:$0xff]  ;;  %v397_v3 = vld [vmem:[%s1837_s26 + $0x38] sm:$0xff]  ;;  %v608_v7 = vld [vmem:[#allocation6 + $0x10] sm:$0xff] }
  0x47   : > { %455 = vmatpush.msra.mxu0 %v414_v22  ;;  %1410 = vmatpush.msra.mxu2 %v414_v22  ;;  %v626_v2 = vld [vmem:[#allocation6 + $0xa0] sm:$0xff]  ;;  %v609_v5 = vld [vmem:[#allocation6 + $0x18] sm:$0xff]  ;;  %v624_v8 = vld [vmem:[#allocation6 + $0x90] sm:$0xff] }
  0x48   : > { %520 = vmatpush.msra.mxu1 %v415_v23  ;;  %1426 = vmatpush.msra.mxu3 %v415_v23  ;;  %v402_v4 = vld [vmem:[%s1837_s26 + $0x60] sm:$0xff]  ;;  %v625_v6 = vld [vmem:[#allocation6 + $0x98] sm:$0xff]  ;;  %v607_v9 = vld [vmem:[#allocation6 + $0x8] sm:$0xff] }
  0x49   : > { %456 = vmatpush.msra.mxu0 %v412_v24  ;;  %1411 = vmatpush.msra.mxu2 %v412_v24  ;;  %v623_v10 = vld [vmem:[#allocation6 + $0x88] sm:$0xff]  ;;  %v404_v12 = vld [vmem:[%s1837_s26 + $0x70] sm:$0xff]  ;;  %v405_v13 = vld [vmem:[%s1837_s26 + $0x78] sm:$0xff] }
  0x4a   : > { %521 = vmatpush.msra.mxu1 %v413_v25  ;;  %1427 = vmatpush.msra.mxu3 %v413_v25  ;;  %v403_v11 = vld [vmem:[%s1837_s26 + $0x68] sm:$0xff]  ;;  %v606_v14 = vld [vmem:[#allocation6] sm:$0xff] }
  0x4b   : > { %457 = vmatpush.msra.mxu0 %v410_v26  ;;  %1412 = vmatpush.msra.mxu2 %v410_v26  ;;  %v622_v15 = vld [vmem:[#allocation6 + $0x80] sm:$0xff] }
  0x4c   : > { %522 = vmatpush.msra.mxu1 %v411_v27  ;;  %1428 = vmatpush.msra.mxu3 %v411_v27  ;;  %v438_v16 = vld [vmem:[%s2097_s2] sm:$0x3] }
  0x4d   : > { %458 = vmatpush.msra.mxu0 %v408_v28  ;;  %1413 = vmatpush.msra.mxu2 %v408_v28  ;;  %v1866_v17 = vperm.slane %v438_v16, 0  ;;  %v1868_v18 = vperm.slane %v438_v16, 1 }
  0x4e   : > { %523 = vmatpush.msra.mxu1 %v409_v29  ;;  %1429 = vmatpush.msra.mxu3 %v409_v29 }
  0x4f   : > { %459 = vmatpush.msra.mxu0 %v406_v30  ;;  %1414 = vmatpush.msra.mxu2 %v406_v30 }
  0x50   : > { %524 = vmatpush.msra.mxu1 %v407_v31  ;;  %460 = vmatmul.f32.vlgmr.msra.gmra.mxu0 %v390_v32 }
  0x51   : > { %525 = vmatmul.f32.vlgmr.msra.gmra.mxu1 %v390_v32  ;;  %1430 = vmatpush.msra.mxu3 %v407_v31 }
  0x52   : > { %484 = vmatmul.f32.vlgmr.msra.gmra.mxu2 %v398_v36  ;;  %549 = vmatmul.f32.vlgmr.msra.gmra.mxu3 %v398_v36 }
  0x53   : > { %642 = vmatpush.msrb.mxu2 %v621_v37  ;;  %707 = vmatpush.msrb.mxu3 %v637_v38 }
  0x55   : > { %643 = vmatpush.msrb.mxu2 %v620_v39  ;;  %708 = vmatpush.msrb.mxu3 %v636_v40 }
  0x57   : > { %644 = vmatpush.msrb.mxu2 %v619_v41  ;;  %709 = vmatpush.msrb.mxu3 %v635_v42 }
  0x58   : > { %463 = vmatmul.f32.gmra.mxu0 %v391_v33 }
  0x59   : > { %528 = vmatmul.f32.gmra.mxu1 %v391_v33  ;;  %645 = vmatpush.msrb.mxu2 %v618_v45 }
  0x5a   : > { %487 = vmatmul.f32.gmra.mxu2 %v399_v44  ;;  %552 = vmatmul.f32.gmra.mxu3 %v399_v44 }
  0x5b   : > { %710 = vmatpush.msrb.mxu3 %v634_v46  ;;  %646 = vmatpush.msrb.mxu2 %v617_v47 }
  0x5d   : > { %711 = vmatpush.msrb.mxu3 %v633_v48  ;;  %647 = vmatpush.msrb.mxu2 %v616_v49 }
  0x5f   : > { %712 = vmatpush.msrb.mxu3 %v632_v50  ;;  %648 = vmatpush.msrb.mxu2 %v615_v53 }
  0x60   : > { %466 = vmatmul.f32.gmra.mxu0 %v392_v34 }
  0x61   : > { %531 = vmatmul.f32.gmra.mxu1 %v392_v34  ;;  %713 = vmatpush.msrb.mxu3 %v631_v54 }
  0x62   : > { %490 = vmatmul.f32.gmra.mxu2 %v400_v52  ;;  %555 = vmatmul.f32.gmra.mxu3 %v400_v52 }
  0x63   : > { %649 = vmatpush.msrb.mxu2 %v614_v55  ;;  %714 = vmatpush.msrb.mxu3 %v630_v56 }
  0x65   : > { %650 = vmatpush.msrb.mxu2 %v613_v57  ;;  %715 = vmatpush.msrb.mxu3 %v629_v58  ;;  %v803_v57 = vld [vmem:[%s2100_s5 + $0x78] sm:$0xff]  ;;  %v802_v58 = vld [vmem:[%s2100_s5 + $0x70] sm:$0xff] }
  0x66   : > { %808 = vmatpush.msrb.mxu0 %v803_v57 }
  0x67   : > { %651 = vmatpush.msrb.mxu2 %v612_v61  ;;  %716 = vmatpush.msrb.mxu3 %v628_v62 }
  0x68   : > { %469 = vmatmul.f32.gmra.mxu0 %v393_v35 }
  0x69   : > { %534 = vmatmul.f32.gmra.mxu1 %v393_v35  ;;  %652 = vmatpush.msrb.mxu2 %v611_v63 }
  0x6a   : > { %493 = vmatmul.f32.gmra.mxu2 %v401_v60  ;;  %558 = vmatmul.f32.gmra.mxu3 %v401_v60 }
  0x6b   : > { %717 = vmatpush.msrb.mxu3 %v627_v0  ;;  %653 = vmatpush.msrb.mxu2 %v610_v1  ;;  %v801_v1 = vld [vmem:[%s2100_s5 + $0x68] sm:$0xff] }
  0x6c   : > { %809 = vmatpush.msrb.mxu0 %v802_v58 }
  0x6d   : > { %718 = vmatpush.msrb.mxu3 %v626_v2  ;;  %654 = vmatpush.msrb.mxu2 %v609_v5  ;;  %v800_v2 = vld [vmem:[%s2100_s5 + $0x60] sm:$0xff] }
  0x6e   : > { %810 = vmatpush.msrb.mxu0 %v801_v1 }
  0x6f   : > { %719 = vmatpush.msrb.mxu3 %v625_v6  ;;  %655 = vmatpush.msrb.mxu2 %v608_v7 }
  0x70   : > { %472 = vmatmul.f32.gmra.mxu0 %v394_v43 }
  0x71   : > { %537 = vmatmul.f32.gmra.mxu1 %v394_v43  ;;  %720 = vmatpush.msrb.mxu3 %v624_v8 }
  0x72   : > { %496 = vmatmul.f32.gmra.mxu2 %v402_v4  ;;  %561 = vmatmul.f32.gmra.mxu3 %v402_v4 }
  0x73   : > { %656 = vmatpush.msrb.mxu2 %v607_v9  ;;  %721 = vmatpush.msrb.mxu3 %v623_v10 }
  0x74   : > { %811 = vmatpush.msrb.mxu0 %v800_v2 }
  0x75   : > { %657 = vmatpush.msrb.mxu2 %v606_v14  ;;  %722 = vmatpush.msrb.mxu3 %v622_v15  ;;  %v798_v14 = vld [vmem:[%s2100_s5 + $0x50] sm:$0xff] }
  0x78   : > { %475 = vmatmul.f32.gmra.mxu0 %v395_v51 }
  0x79   : > { %540 = vmatmul.f32.gmra.mxu1 %v395_v51 }
  0x7a   : > { %499 = vmatmul.f32.gmra.mxu2 %v403_v11  ;;  %564 = vmatmul.f32.gmra.mxu3 %v403_v11 }
  0x80   : > { %478 = vmatmul.f32.gmra.mxu0 %v396_v59 }
  0x81   : > { %543 = vmatmul.f32.gmra.mxu1 %v396_v59 }
  0x82   : > { %502 = vmatmul.f32.gmra.mxu2 %v404_v12  ;;  %567 = vmatmul.f32.gmra.mxu3 %v404_v12 }
  0x88   : > { %481 = vmatmul.f32.gmra.mxu0 %v397_v3 }
  0x89   : > { %546 = vmatmul.f32.gmra.mxu1 %v397_v3 }
  0x8a   : > { %505 = vmatmul.f32.gmra.mxu2 %v405_v13  ;;  %570 = vmatmul.f32.gmra.mxu3 %v405_v13  ;;  %v799_v13 = vld [vmem:[%s2100_s5 + $0x58] sm:$0xff] }
  0x8b   : > { %812 = vmatpush.msrb.mxu0 %v799_v13 }
  0x8d   : > { %813 = vmatpush.msrb.mxu0 %v798_v14 }
  0xcd   : > { %v461_v19 = vpop.f32.mrf.mxu0 }
  0xce   : > { %v526_v20 = vpop.f32.mrf.mxu1  ;;  %v462_v21 = vadd.f32 %v461_v19, %v1866_v17 }
  0xcf   : > { %v527_v22 = vadd.f32 %v526_v20, %v1868_v18 }
  0xd0   : > { %v574_v23 = vmax.f32 %v462_v21, 0.0 }
  0xd1   : > { %v575_v24 = vmax.f32 %v527_v22, 0.0 }
  0xd2   : > { %658 = vmatmul.f32.vlgmr.msrb.gmra.mxu2 %v574_v23  ;;  %v797_v23 = vld [vmem:[%s2100_s5 + $0x48] sm:$0xff] }
  0xd3   : > { %723 = vmatmul.f32.vlgmr.msrb.gmra.mxu3 %v575_v24  ;;  %v796_v24 = vld [vmem:[%s2100_s5 + $0x40] sm:$0xff]  ;;  %814 = vmatpush.msrb.mxu0 %v797_v23 }
  0xd5   : > { %v464_v25 = vpop.f32.mrf.mxu0  ;;  %v485_v55 = vpop.f32.mrf.mxu2  ;;  %815 = vmatpush.msrb.mxu0 %v796_v24 }
  0xd6   : > { %v529_v26 = vpop.f32.mrf.mxu1  ;;  %v465_v27 = vadd.f32 %v464_v25, %v1866_v17  ;;  %v550_v56 = vpop.f32.mrf.mxu3  ;;  %v486_v11 = vadd.f32 %v485_v55, %v1866_v17 }
  0xd7   : > { %v530_v28 = vadd.f32 %v529_v26, %v1868_v18  ;;  %v551_v12 = vadd.f32 %v550_v56, %v1868_v18 }
  0xd8   : > { %v576_v29 = vmax.f32 %v465_v27, 0.0  ;;  %v590_v19 = vmax.f32 %v486_v11, 0.0 }
  0xd9   : > { %v577_v30 = vmax.f32 %v530_v28, 0.0  ;;  %v591_v20 = vmax.f32 %v551_v12, 0.0 }
  0xda   : > { %661 = vmatmul.f32.gmra.mxu2 %v576_v29 }
  0xdb   : > { %726 = vmatmul.f32.gmra.mxu3 %v577_v30 }
  0xdd   : > { %v467_v31 = vpop.f32.mrf.mxu0  ;;  %v488_v3 = vpop.f32.mrf.mxu2 }
  0xde   : > { %v532_v32 = vpop.f32.mrf.mxu1  ;;  %v468_v33 = vadd.f32 %v467_v31, %v1866_v17  ;;  %v553_v4 = vpop.f32.mrf.mxu3  ;;  %v489_v21 = vadd.f32 %v488_v3, %v1866_v17  ;;  %v795_v31 = vld [vmem:[%s2100_s5 + $0x38] sm:$0xff] }
  0xdf   : > { %v533_v34 = vadd.f32 %v532_v32, %v1868_v18  ;;  %v554_v22 = vadd.f32 %v553_v4, %v1868_v18  ;;  %v794_v32 = vld [vmem:[%s2100_s5 + $0x30] sm:$0xff]  ;;  %816 = vmatpush.msrb.mxu0 %v795_v31 }
  0xe0   : > { %v578_v35 = vmax.f32 %v468_v33, 0.0  ;;  %v592_v25 = vmax.f32 %v489_v21, 0.0 }
  0xe1   : > { %v579_v36 = vmax.f32 %v533_v34, 0.0  ;;  %v593_v26 = vmax.f32 %v554_v22, 0.0  ;;  %817 = vmatpush.msrb.mxu0 %v794_v32 }
  0xe2   : > { %664 = vmatmul.f32.gmra.mxu2 %v578_v35 }
  0xe3   : > { %729 = vmatmul.f32.gmra.mxu3 %v579_v36 }
  0xe5   : > { %v470_v37 = vpop.f32.mrf.mxu0  ;;  %v491_v15 = vpop.f32.mrf.mxu2 }
  0xe6   : > { %v535_v38 = vpop.f32.mrf.mxu1  ;;  %v471_v39 = vadd.f32 %v470_v37, %v1866_v17  ;;  %v556_v16 = vpop.f32.mrf.mxu3  ;;  %v492_v29 = vadd.f32 %v491_v15, %v1866_v17 }
  0xe7   : > { %v536_v40 = vadd.f32 %v535_v38, %v1868_v18  ;;  %v557_v30 = vadd.f32 %v556_v16, %v1868_v18 }
  0xe8   : > { %v580_v41 = vmax.f32 %v471_v39, 0.0  ;;  %v594_v33 = vmax.f32 %v492_v29, 0.0  ;;  %v793_v39 = vld [vmem:[%s2100_s5 + $0x28] sm:$0xff] }
  0xe9   : > { %v581_v42 = vmax.f32 %v536_v40, 0.0  ;;  %v595_v34 = vmax.f32 %v557_v30, 0.0  ;;  %v792_v40 = vld [vmem:[%s2100_s5 + $0x20] sm:$0xff]  ;;  %818 = vmatpush.msrb.mxu0 %v793_v39 }
  0xea   : > { %667 = vmatmul.f32.gmra.mxu2 %v580_v41 }
  0xeb   : > { %732 = vmatmul.f32.gmra.mxu3 %v581_v42  ;;  %819 = vmatpush.msrb.mxu0 %v792_v40 }
  0xed   : > { %v473_v43 = vpop.f32.mrf.mxu0  ;;  %v494_v27 = vpop.f32.mrf.mxu2 }
  0xee   : > { %v538_v44 = vpop.f32.mrf.mxu1  ;;  %v474_v45 = vadd.f32 %v473_v43, %v1866_v17  ;;  %v559_v28 = vpop.f32.mrf.mxu3  ;;  %v495_v37 = vadd.f32 %v494_v27, %v1866_v17 }
  0xef   : > { %v539_v46 = vadd.f32 %v538_v44, %v1868_v18  ;;  %v560_v38 = vadd.f32 %v559_v28, %v1868_v18 }
  0xf0   : > { %v582_v47 = vmax.f32 %v474_v45, 0.0  ;;  %v596_v41 = vmax.f32 %v495_v37, 0.0  ;;  %v791_v45 = vld [vmem:[%s2100_s5 + $0x18] sm:$0xff]  ;;  %v903_v37 = vld [vmem:[%s2102_s7 + $0x70] sm:$0xff] }
  0xf1   : > { %v583_v48 = vmax.f32 %v539_v46, 0.0  ;;  %v597_v42 = vmax.f32 %v560_v38, 0.0  ;;  %v790_v46 = vld [vmem:[%s2100_s5 + $0x10] sm:$0xff]  ;;  %820 = vmatpush.msrb.mxu0 %v791_v45 }
  0xf2   : > { %670 = vmatmul.f32.gmra.mxu2 %v582_v47 }
  0xf3   : > { %735 = vmatmul.f32.gmra.mxu3 %v583_v48  ;;  %821 = vmatpush.msrb.mxu0 %v790_v46 }
  0xf5   : > { %v476_v49 = vpop.f32.mrf.mxu0  ;;  %v497_v35 = vpop.f32.mrf.mxu2 }
  0xf6   : > { %v541_v50 = vpop.f32.mrf.mxu1  ;;  %v477_v51 = vadd.f32 %v476_v49, %v1866_v17  ;;  %v562_v36 = vpop.f32.mrf.mxu3  ;;  %v498_v43 = vadd.f32 %v497_v35, %v1866_v17  ;;  %v789_v49 = vld [vmem:[%s2100_s5 + $0x8] sm:$0xff] }
  0xf7   : > { %v542_v52 = vadd.f32 %v541_v50, %v1868_v18  ;;  %v563_v44 = vadd.f32 %v562_v36, %v1868_v18  ;;  %822 = vmatpush.msrb.mxu0 %v789_v49 }
  0xf8   : > { %v584_v53 = vmax.f32 %v477_v51, 0.0  ;;  %v598_v50 = vmax.f32 %v498_v43, 0.0 }
  0xf9   : > { %v585_v54 = vmax.f32 %v542_v52, 0.0  ;;  %v599_v51 = vmax.f32 %v563_v44, 0.0  ;;  %v901_v44 = vld [vmem:[%s2102_s7 + $0x60] sm:$0xff] }
  0xfa   : > { %673 = vmatmul.f32.gmra.mxu2 %v584_v53 }
  0xfb   : > { %738 = vmatmul.f32.gmra.mxu3 %v585_v54 }
  0xfd   : > { %v479_v59 = vpop.f32.mrf.mxu0  ;;  %v500_v47 = vpop.f32.mrf.mxu2 }
  0xfe   : > { %v544_v60 = vpop.f32.mrf.mxu1  ;;  %v480_v61 = vadd.f32 %v479_v59, %v1866_v17  ;;  %v565_v48 = vpop.f32.mrf.mxu3  ;;  %v501_v52 = vadd.f32 %v500_v47, %v1866_v17 }
  0xff   : > { %v545_v62 = vadd.f32 %v544_v60, %v1868_v18  ;;  %v566_v53 = vadd.f32 %v565_v48, %v1868_v18  ;;  %v788_v60 = vld [vmem:[%s2100_s5] sm:$0xff]  ;;  %v900_v48 = vld [vmem:[%s2102_s7 + $0x58] sm:$0xff] }
 0x100   : > { %v586_v63 = vmax.f32 %v480_v61, 0.0  ;;  %v600_v56 = vmax.f32 %v501_v52, 0.0  ;;  %823 = vmatpush.msrb.mxu0 %v788_v60 }
 0x101   : > { %v587_v0 = vmax.f32 %v545_v62, 0.0  ;;  %v601_v57 = vmax.f32 %v566_v53, 0.0 }
 0x102   : > { %676 = vmatmul.f32.gmra.mxu2 %v586_v63 }
 0x103   : > { %741 = vmatmul.f32.gmra.mxu3 %v587_v0 }
 0x105   : > { %v482_v5 = vpop.f32.mrf.mxu0  ;;  %v503_v54 = vpop.f32.mrf.mxu2 }
 0x106   : > { %v547_v6 = vpop.f32.mrf.mxu1  ;;  %v483_v7 = vadd.f32 %v482_v5, %v1866_v17  ;;  %v568_v55 = vpop.f32.mrf.mxu3  ;;  %v504_v58 = vadd.f32 %v503_v54, %v1866_v17  ;;  %v1953_v5 = vld [vmem:[%s2099_s4] ss:$0 sm:$0xff] }
 0x107   : > { %v548_v8 = vadd.f32 %v547_v6, %v1868_v18  ;;  %v569_v59 = vadd.f32 %v568_v55, %v1868_v18  ;;  %v898_v55 = vld [vmem:[%s2102_s7 + $0x48] sm:$0xff] }
 0x108   : > { %v588_v9 = vmax.f32 %v483_v7, 0.0  ;;  %v602_v61 = vmax.f32 %v504_v58, 0.0  ;;  %v897_v58 = vld [vmem:[%s2102_s7 + $0x40] sm:$0xff] }
 0x109   : > { %v589_v10 = vmax.f32 %v548_v8, 0.0  ;;  %v603_v62 = vmax.f32 %v569_v59, 0.0 }
 0x10a   : > { %679 = vmatmul.f32.gmra.mxu2 %v588_v9 }
 0x10b   : > { %744 = vmatmul.f32.gmra.mxu3 %v589_v10 }
 0x10d   : > { %v506_v63 = vpop.f32.mrf.mxu2 }
 0x10e   : > { %v571_v0 = vpop.f32.mrf.mxu3  ;;  %v507_v1 = vadd.f32 %v506_v63, %v1866_v17 }
 0x10f   : > { %v572_v2 = vadd.f32 %v571_v0, %v1868_v18 }
 0x110   : > { %v604_v3 = vmax.f32 %v507_v1, 0.0  ;;  %v895_v1 = vld [vmem:[%s2102_s7 + $0x30] sm:$0xff] }
 0x111   : > { %v605_v4 = vmax.f32 %v572_v2, 0.0 }
 0x112   : > { %682 = vmatmul.f32.gmra.mxu2 %v590_v19 }
 0x113   : > { %747 = vmatmul.f32.gmra.mxu3 %v591_v20 }
 0x11a   : > { %685 = vmatmul.f32.gmra.mxu2 %v592_v25 }
 0x11b   : > { %750 = vmatmul.f32.gmra.mxu3 %v593_v26 }
 0x122   : > { %688 = vmatmul.f32.gmra.mxu2 %v594_v33 }
 0x123   : > { %753 = vmatmul.f32.gmra.mxu3 %v595_v34  ;;  %v904_v34 = vld [vmem:[%s2102_s7 + $0x78] sm:$0xff] }
 0x124   : > { %909 = vmatpush.msrb.mxu1 %v904_v34 }
 0x126   : > { %910 = vmatpush.msrb.mxu1 %v903_v37 }
 0x12a   : > { %691 = vmatmul.f32.gmra.mxu2 %v596_v41  ;;  %v902_v41 = vld [vmem:[%s2102_s7 + $0x68] sm:$0xff] }
 0x12b   : > { %756 = vmatmul.f32.gmra.mxu3 %v597_v42  ;;  %911 = vmatpush.msrb.mxu1 %v902_v41 }
 0x12d   : > { %912 = vmatpush.msrb.mxu1 %v901_v44 }
 0x12f   : > { %913 = vmatpush.msrb.mxu1 %v900_v48 }
 0x132   : > { %694 = vmatmul.f32.gmra.mxu2 %v598_v50 }
 0x133   : > { %759 = vmatmul.f32.gmra.mxu3 %v599_v51  ;;  %v899_v51 = vld [vmem:[%s2102_s7 + $0x50] sm:$0xff] }
 0x134   : > { %914 = vmatpush.msrb.mxu1 %v899_v51 }
 0x136   : > { %915 = vmatpush.msrb.mxu1 %v898_v55 }
 0x138   : > { %916 = vmatpush.msrb.mxu1 %v897_v58 }
 0x13a   : > { %697 = vmatmul.f32.gmra.mxu2 %v600_v56 }
 0x13b   : > { %762 = vmatmul.f32.gmra.mxu3 %v601_v57 }
 0x142   : > { %700 = vmatmul.f32.gmra.mxu2 %v602_v61 }
 0x143   : > { %765 = vmatmul.f32.gmra.mxu3 %v603_v62  ;;  %v896_v62 = vld [vmem:[%s2102_s7 + $0x38] sm:$0xff] }
 0x144   : > { %917 = vmatpush.msrb.mxu1 %v896_v62 }
 0x146   : > { %918 = vmatpush.msrb.mxu1 %v895_v1 }
 0x14a   : > { %703 = vmatmul.f32.gmra.mxu2 %v604_v3 }
 0x14b   : > { %768 = vmatmul.f32.gmra.mxu3 %v605_v4 }
 0x155   : > { %v659_v6 = vpop.f32.mrf.mxu2 }
 0x156   : > { %v724_v7 = vpop.f32.mrf.mxu3  ;;  %v660_v8 = vadd.f32 %v1953_v5, %v659_v6  ;;  %v894_v6 = vld [vmem:[%s2102_s7 + $0x28] sm:$0xff] }
 0x157   : > { %919 = vmatpush.msrb.mxu1 %v894_v6 }
 0x158   : > { %v725_v9 = vadd.f32 %v724_v7, %v660_v8 }
 0x15a   : > { %v772_v10 = vmax.f32 %v725_v9, 0.0  ;;  %v893_v9 = vld [vmem:[%s2102_s7 + $0x20] sm:$0xff] }
 0x15b   : > { %920 = vmatpush.msrb.mxu1 %v893_v9 }
 0x15c   : > { %824 = vmatmul.f32.vlgmr.msrb.gmra.mxu0 %v772_v10 }
 0x15d   : > { %v662_v11 = vpop.f32.mrf.mxu2 }
 0x15e   : > { %v727_v17 = vpop.f32.mrf.mxu3  ;;  %v663_v18 = vadd.f32 %v1953_v5, %v662_v11 }
 0x160   : > { %v728_v12 = vadd.f32 %v727_v17, %v663_v18  ;;  %v892_v18 = vld [vmem:[%s2102_s7 + $0x18] sm:$0xff] }
 0x161   : > { %921 = vmatpush.msrb.mxu1 %v892_v18 }
 0x162   : > { %v773_v13 = vmax.f32 %v728_v12, 0.0 }
 0x164   : > { %827 = vmatmul.f32.gmra.mxu0 %v773_v13 }
 0x165   : > { %v665_v14 = vpop.f32.mrf.mxu2 }
 0x166   : > { %v730_v15 = vpop.f32.mrf.mxu3  ;;  %v666_v16 = vadd.f32 %v1953_v5, %v665_v14  ;;  %v891_v14 = vld [vmem:[%s2102_s7 + $0x10] sm:$0xff] }
 0x167   : > { %922 = vmatpush.msrb.mxu1 %v891_v14 }
 0x168   : > { %v731_v19 = vadd.f32 %v730_v15, %v666_v16  ;;  %v890_v15 = vld [vmem:[%s2102_s7 + $0x8] sm:$0xff] }
 0x169   : > { %923 = vmatpush.msrb.mxu1 %v890_v15 }
 0x16a   : > { %v774_v20 = vmax.f32 %v731_v19, 0.0 }
 0x16c   : > { %830 = vmatmul.f32.gmra.mxu0 %v774_v20 }
 0x16d   : > { %v668_v21 = vpop.f32.mrf.mxu2 }
 0x16e   : > { %v733_v22 = vpop.f32.mrf.mxu3  ;;  %v669_v23 = vadd.f32 %v1953_v5, %v668_v21 }
 0x170   : > { %v734_v24 = vadd.f32 %v733_v22, %v669_v23  ;;  %v889_v23 = vld [vmem:[%s2102_s7] sm:$0xff] }
 0x171   : > { %924 = vmatpush.msrb.mxu1 %v889_v23 }
 0x172   : > { %v775_v25 = vmax.f32 %v734_v24, 0.0 }
 0x174   : > { %833 = vmatmul.f32.gmra.mxu0 %v775_v25 }
 0x175   : > { %v671_v26 = vpop.f32.mrf.mxu2 }
 0x176   : > { %v736_v27 = vpop.f32.mrf.mxu3  ;;  %v672_v28 = vadd.f32 %v1953_v5, %v671_v26 }
 0x178   : > { %v737_v29 = vadd.f32 %v736_v27, %v672_v28 }
 0x17a   : > { %v776_v30 = vmax.f32 %v737_v29, 0.0 }
 0x17c   : > { %836 = vmatmul.f32.gmra.mxu0 %v776_v30 }
 0x17d   : > { %v674_v31 = vpop.f32.mrf.mxu2 }
 0x17e   : > { %v739_v32 = vpop.f32.mrf.mxu3  ;;  %v675_v33 = vadd.f32 %v1953_v5, %v674_v31 }
 0x180   : > { %v740_v35 = vadd.f32 %v739_v32, %v675_v33 }
 0x182   : > { %v777_v36 = vmax.f32 %v740_v35, 0.0 }
 0x184   : > { %839 = vmatmul.f32.gmra.mxu0 %v777_v36 }
 0x185   : > { %v677_v38 = vpop.f32.mrf.mxu2 }
 0x186   : > { %v742_v39 = vpop.f32.mrf.mxu3  ;;  %v678_v40 = vadd.f32 %v1953_v5, %v677_v38 }
 0x188   : > { %v743_v42 = vadd.f32 %v742_v39, %v678_v40  ;;  %v1496_v39 = vld [vmem:[%s2101_s6] ss:$0 sm:$0xff] }
 0x18a   : > { %v778_v43 = vmax.f32 %v743_v42, 0.0 }
 0x18c   : > { %842 = vmatmul.f32.gmra.mxu0 %v778_v43 }
 0x18d   : > { %v680_v45 = vpop.f32.mrf.mxu2 }
 0x18e   : > { %v745_v46 = vpop.f32.mrf.mxu3  ;;  %v681_v47 = vadd.f32 %v1953_v5, %v680_v45 }
 0x190   : > { %v746_v49 = vadd.f32 %v745_v46, %v681_v47 }
 0x192   : > { %v779_v50 = vmax.f32 %v746_v49, 0.0 }
 0x194   : > { %845 = vmatmul.f32.gmra.mxu0 %v779_v50 }
 0x195   : > { %v683_v52 = vpop.f32.mrf.mxu2 }
 0x196   : > { %v748_v53 = vpop.f32.mrf.mxu3  ;;  %v684_v54 = vadd.f32 %v1953_v5, %v683_v52 }
 0x198   : > { %v749_v56 = vadd.f32 %v748_v53, %v684_v54 }
 0x19a   : > { %v780_v57 = vmax.f32 %v749_v56, 0.0 }
 0x19c   : > { %848 = vmatmul.f32.gmra.mxu0 %v780_v57 }
 0x19d   : > { %v686_v59 = vpop.f32.mrf.mxu2 }
 0x19e   : > { %v751_v60 = vpop.f32.mrf.mxu3  ;;  %v687_v61 = vadd.f32 %v1953_v5, %v686_v59 }
 0x1a0   : > { %v752_v63 = vadd.f32 %v751_v60, %v687_v61 }
 0x1a2   : > { %v781_v0 = vmax.f32 %v752_v63, 0.0 }
 0x1a4   : > { %851 = vmatmul.f32.gmra.mxu0 %v781_v0 }
 0x1a5   : > { %v689_v2 = vpop.f32.mrf.mxu2 }
 0x1a6   : > { %v754_v3 = vpop.f32.mrf.mxu3  ;;  %v690_v4 = vadd.f32 %v1953_v5, %v689_v2 }
 0x1a8   : > { %v755_v7 = vadd.f32 %v754_v3, %v690_v4 }
 0x1aa   : > { %v782_v8 = vmax.f32 %v755_v7, 0.0 }
 0x1ac   : > { %854 = vmatmul.f32.gmra.mxu0 %v782_v8 }
 0x1ad   : > { %v692_v10 = vpop.f32.mrf.mxu2 }
 0x1ae   : > { %v757_v11 = vpop.f32.mrf.mxu3  ;;  %v693_v17 = vadd.f32 %v1953_v5, %v692_v10 }
 0x1b0   : > { %v758_v12 = vadd.f32 %v757_v11, %v693_v17 }
 0x1b2   : > { %v783_v13 = vmax.f32 %v758_v12, 0.0 }
 0x1b4   : > { %857 = vmatmul.f32.gmra.mxu0 %v783_v13 }
 0x1b5   : > { %v695_v16 = vpop.f32.mrf.mxu2 }
 0x1b6   : > { %v760_v19 = vpop.f32.mrf.mxu3  ;;  %v696_v20 = vadd.f32 %v1953_v5, %v695_v16 }
 0x1b8   : > { %v761_v21 = vadd.f32 %v760_v19, %v696_v20 }
 0x1ba   : > { %v784_v22 = vmax.f32 %v761_v21, 0.0 }
 0x1bc   : > { %860 = vmatmul.f32.gmra.mxu0 %v784_v22 }
 0x1bd   : > { %v698_v24 = vpop.f32.mrf.mxu2 }
 0x1be   : > { %v763_v25 = vpop.f32.mrf.mxu3  ;;  %v699_v26 = vadd.f32 %v1953_v5, %v698_v24  ;;  %v2025_v24 = vld [vmem:[%s2103_s8] ss:$0 sm:$0xff] }
 0x1c0   : > { %v764_v27 = vadd.f32 %v763_v25, %v699_v26 }
 0x1c2   : > { %v785_v28 = vmax.f32 %v764_v27, 0.0 }
 0x1c4   : > { %863 = vmatmul.f32.gmra.mxu0 %v785_v28 }
 0x1c5   : > { %v701_v29 = vpop.f32.mrf.mxu2 }
 0x1c6   : > { %v766_v30 = vpop.f32.mrf.mxu3  ;;  %v702_v31 = vadd.f32 %v1953_v5, %v701_v29 }
 0x1c8   : > { %v767_v32 = vadd.f32 %v766_v30, %v702_v31 }
 0x1ca   : > { %v786_v33 = vmax.f32 %v767_v32, 0.0 }
 0x1cc   : > { %866 = vmatmul.f32.gmra.mxu0 %v786_v33 }
 0x1cd   : > { %v704_v34 = vpop.f32.mrf.mxu2 }
 0x1ce   : > { %v769_v35 = vpop.f32.mrf.mxu3  ;;  %v705_v36 = vadd.f32 %v1953_v5, %v704_v34 }
 0x1d0   : > { %v770_v37 = vadd.f32 %v769_v35, %v705_v36 }
 0x1d2   : > { %v787_v38 = vmax.f32 %v770_v37, 0.0 }
 0x1d4   : > { %869 = vmatmul.f32.gmra.mxu0 %v787_v38 }
 0x1d9   : > { %v825_v40 = vpop.f32.mrf.mxu0 }
 0x1da   : > { %v826_v41 = vadd.f32 %v1496_v39, %v825_v40 }
 0x1dc   : > { %v873_v42 = vmax.f32 %v826_v41, 0.0 }
 0x1de   : > { %925 = vmatmul.f32.vlgmr.msrb.gmra.mxu1 %v873_v42 }
 0x1e1   : > { %v828_v43 = vpop.f32.mrf.mxu0 }
 0x1e2   : > { %v829_v44 = vadd.f32 %v1496_v39, %v828_v43 }
 0x1e4   : > { %v874_v45 = vmax.f32 %v829_v44, 0.0 }
 0x1e6   : > { %928 = vmatmul.f32.gmra.mxu1 %v874_v45 }
 0x1e9   : > { %v831_v46 = vpop.f32.mrf.mxu0 }
 0x1ea   : > { %v832_v47 = vadd.f32 %v1496_v39, %v831_v46 }
 0x1ec   : > { %v875_v48 = vmax.f32 %v832_v47, 0.0 }
 0x1ee   : > { %931 = vmatmul.f32.gmra.mxu1 %v875_v48 }
 0x1f1   : > { %v834_v5 = vpop.f32.mrf.mxu0 }
 0x1f2   : > { %v835_v49 = vadd.f32 %v1496_v39, %v834_v5 }
 0x1f4   : > { %v876_v50 = vmax.f32 %v835_v49, 0.0 }
 0x1f6   : > { %934 = vmatmul.f32.gmra.mxu1 %v876_v50 }
 0x1f9   : > { %v837_v51 = vpop.f32.mrf.mxu0 }
 0x1fa   : > { %v838_v52 = vadd.f32 %v1496_v39, %v837_v51 }
 0x1fc   : > { %v877_v53 = vmax.f32 %v838_v52, 0.0 }
 0x1fe   : > { %937 = vmatmul.f32.gmra.mxu1 %v877_v53 }
 0x201   : > { %v840_v54 = vpop.f32.mrf.mxu0 }
 0x202   : > { %v841_v55 = vadd.f32 %v1496_v39, %v840_v54 }
 0x204   : > { %v878_v56 = vmax.f32 %v841_v55, 0.0 }
 0x206   : > { %940 = vmatmul.f32.gmra.mxu1 %v878_v56 }
 0x209   : > { %v843_v57 = vpop.f32.mrf.mxu0 }
 0x20a   : > { %v844_v58 = vadd.f32 %v1496_v39, %v843_v57 }
 0x20c   : > { %v879_v59 = vmax.f32 %v844_v58, 0.0 }
 0x20e   : > { %943 = vmatmul.f32.gmra.mxu1 %v879_v59 }
 0x211   : > { %v846_v60 = vpop.f32.mrf.mxu0 }
 0x212   : > { %v847_v61 = vadd.f32 %v1496_v39, %v846_v60 }
 0x214   : > { %v880_v62 = vmax.f32 %v847_v61, 0.0 }
 0x216   : > { %946 = vmatmul.f32.gmra.mxu1 %v880_v62 }
 0x219   : > { %v849_v63 = vpop.f32.mrf.mxu0 }
 0x21a   : > { %v850_v0 = vadd.f32 %v1496_v39, %v849_v63 }
 0x21c   : > { %v881_v1 = vmax.f32 %v850_v0, 0.0 }
 0x21e   : > { %949 = vmatmul.f32.gmra.mxu1 %v881_v1 }
 0x221   : > { %v852_v2 = vpop.f32.mrf.mxu0 }
 0x222   : > { %v853_v3 = vadd.f32 %v1496_v39, %v852_v2 }
 0x224   : > { %v882_v4 = vmax.f32 %v853_v3, 0.0 }
 0x226   : > { %952 = vmatmul.f32.gmra.mxu1 %v882_v4 }
 0x229   : > { %v855_v6 = vpop.f32.mrf.mxu0 }
 0x22a   : > { %v856_v7 = vadd.f32 %v1496_v39, %v855_v6 }
 0x22c   : > { %v883_v8 = vmax.f32 %v856_v7, 0.0 }
 0x22e   : > { %955 = vmatmul.f32.gmra.mxu1 %v883_v8 }
 0x231   : > { %v858_v9 = vpop.f32.mrf.mxu0 }
 0x232   : > { %v859_v10 = vadd.f32 %v1496_v39, %v858_v9 }
 0x234   : > { %v884_v11 = vmax.f32 %v859_v10, 0.0 }
 0x236   : > { %958 = vmatmul.f32.gmra.mxu1 %v884_v11 }
 0x239   : > { %v861_v17 = vpop.f32.mrf.mxu0 }
 0x23a   : > { %v862_v18 = vadd.f32 %v1496_v39, %v861_v17 }
 0x23c   : > { %v885_v12 = vmax.f32 %v862_v18, 0.0 }
 0x23e   : > { %961 = vmatmul.f32.gmra.mxu1 %v885_v12 }
 0x241   : > { %v864_v13 = vpop.f32.mrf.mxu0 }
 0x242   : > { %v865_v14 = vadd.f32 %v1496_v39, %v864_v13 }
 0x244   : > { %v886_v15 = vmax.f32 %v865_v14, 0.0 }
 0x246   : > { %964 = vmatmul.f32.gmra.mxu1 %v886_v15 }
 0x249   : > { %v867_v16 = vpop.f32.mrf.mxu0 }
 0x24a   : > { %v868_v19 = vadd.f32 %v1496_v39, %v867_v16 }
 0x24c   : > { %v887_v20 = vmax.f32 %v868_v19, 0.0 }
 0x24e   : > { %967 = vmatmul.f32.gmra.mxu1 %v887_v20 }
 0x251   : > { %v870_v21 = vpop.f32.mrf.mxu0 }
 0x252   : > { %v871_v22 = vadd.f32 %v1496_v39, %v870_v21 }
 0x254   : > { %v888_v23 = vmax.f32 %v871_v22, 0.0 }
 0x256   : > { %970 = vmatmul.f32.gmra.mxu1 %v888_v23 }
 0x25b   : > { %v926_v25 = vpop.f32.mrf.mxu1 }
 0x25c   : > { %v927_v26 = vadd.f32 %v2025_v24, %v926_v25 }
 0x25e   : > { %v974_v27 = vsub.f32 0.0, %v927_v26 }
 0x260   : > { %v990_v28 = vmul.f32 1.442695, %v974_v27 }
 0x262   : > { %1498 = vpow2.f32 %v990_v28 }
 0x263   : > { %v929_v29 = vpop.f32.mrf.mxu1 }
 0x264   : > { %v930_v30 = vadd.f32 %v2025_v24, %v929_v29 }
 0x266   : > { %v975_v31 = vsub.f32 0.0, %v930_v30 }
 0x268   : > { %v1499_v32 = vpop.eup %1498  ;;  %v992_v33 = vmul.f32 1.442695, %v975_v31 }
 0x269   : > { %v1022_v34 = vadd.f32 1.0, %v1499_v32 }
 0x26a   : > { %1500 = vpow2.f32 %v992_v33 }
 0x26b   : > { %1502 = vrcp.f32 %v1022_v34  ;;  %v932_v35 = vpop.f32.mrf.mxu1  ;;  %v1049_v46 = vand.u32 2147483648, %v1022_v34  ;;  %v1047_v48 = vand.u32 2147483647, %v1022_v34  ;;  %vm1043_vm1 = vweird.f32 %v1022_v34 }
 0x26c   : > { %v933_v36 = vadd.f32 %v2025_v24, %v932_v35 }
 0x26d   : > { %v1050_v53 = vor.u32 1.1754944e-38, %v1049_v46  ;;  %vm1048_vm4 = vcmp.eq.f32.partialorder %v1047_v48, 8.507059e+37 }
 0x26e   : > { %v976_v37 = vsub.f32 0.0, %v933_v36 }
 0x270   : > { %v1501_v38 = vpop.eup %1500  ;;  %v994_v39 = vmul.f32 1.442695, %v976_v37 }
 0x271   : > { %v1503_v40 = vpop.eup %1502  ;;  %v1023_v41 = vadd.f32 1.0, %v1501_v38 }
 0x272   : > { %v1039_v42 = vmul.f32 %v1503_v40, %v1022_v34  ;;  %1504 = vpow2.f32 %v994_v39  ;;  %vm1044_vm0 = vweird.f32 %v1503_v40 }
 0x273   : > { %1506 = vrcp.f32 %v1023_v41  ;;  %v935_v43 = vpop.f32.mrf.mxu1  ;;  %vm1045_vm2 = vmor %vm1043_vm1, %vm1044_vm0  ;;  %v1064_v61 = vand.u32 2147483648, %v1023_v41  ;;  %v1062_v63 = vand.u32 2147483647, %v1023_v41  ;;  %vm1058_vm6 = vweird.f32 %v1023_v41 }
 0x274   : > { %v1040_v44 = vsub.f32 1.0, %v1039_v42  ;;  %v936_v45 = vadd.f32 %v2025_v24, %v935_v43 }
 0x275   : > { %v1065_v6 = vor.u32 1.1754944e-38, %v1064_v61  ;;  %vm1063_vm8 = vcmp.eq.f32.partialorder %v1062_v63, 8.507059e+37 }
 0x276   : > { %v1041_v47 = vmul.f32 %v1503_v40, %v1040_v44  ;;  %v977_v5 = vsub.f32 0.0, %v936_v45 }
 0x278   : > { %v1505_v49 = vpop.eup %1504  ;;  %v1042_v50 = vadd.f32 %v1503_v40, %v1041_v47  ;;  %v996_v51 = vmul.f32 1.442695, %v977_v5 }
 0x279   : > { %v1507_v52 = vpop.eup %1506  ;;  %v1024_v54 = vadd.f32 1.0, %v1505_v49 }
 0x27a   : > { %v1046_v55 = vsel %vm1045_vm2, %v1503_v40, %v1042_v50  ;;  %v1054_v56 = vmul.f32 %v1507_v52, %v1023_v41  ;;  %1508 = vpow2.f32 %v996_v51  ;;  %vm1059_vm5 = vweird.f32 %v1507_v52 }
 0x27b   : > { %v1051_v57 = vsel %vm1048_vm4, %v1050_v53, %v1046_v55  ;;  %1510 = vrcp.f32 %v1024_v54  ;;  %v938_v58 = vpop.f32.mrf.mxu1  ;;  %vm1060_vm7 = vmor %vm1058_vm6, %vm1059_vm5  ;;  %v1079_v12 = vand.u32 2147483648, %v1024_v54  ;;  %v1077_v14 = vand.u32 2147483647, %v1024_v54 }
 0x27c   : > { %1279 = vst.msk [vmem:[%s2036_s17] sm:$0xff] %vm1278_vm3, %v1051_v57  ;;  %v1055_v59 = vsub.f32 1.0, %v1054_v56  ;;  %v939_v60 = vadd.f32 %v2025_v24, %v938_v58  ;;  %vm1073_vm10 = vweird.f32 %v1024_v54 }
 0x27d   : > { %v1080_v22 = vor.u32 1.1754944e-38, %v1079_v12  ;;  %vm1078_vm12 = vcmp.eq.f32.partialorder %v1077_v14, 8.507059e+37 }
 0x27e   : > { %v1056_v62 = vmul.f32 %v1507_v52, %v1055_v59  ;;  %v978_v0 = vsub.f32 0.0, %v939_v60 }
 0x280   : > { %v1509_v1 = vpop.eup %1508  ;;  %v1057_v2 = vadd.f32 %v1507_v52, %v1056_v62  ;;  %v998_v3 = vmul.f32 1.442695, %v978_v0 }
 0x281   : > { %v1511_v4 = vpop.eup %1510  ;;  %v1025_v7 = vadd.f32 1.0, %v1509_v1 }
 0x282   : > { %v1061_v8 = vsel %vm1060_vm7, %v1507_v52, %v1057_v2  ;;  %v1069_v9 = vmul.f32 %v1511_v4, %v1024_v54  ;;  %1512 = vpow2.f32 %v998_v3  ;;  %vm1074_vm9 = vweird.f32 %v1511_v4 }
 0x283   : > { %v1066_v10 = vsel %vm1063_vm8, %v1065_v6, %v1061_v8  ;;  %1514 = vrcp.f32 %v1025_v7  ;;  %v941_v11 = vpop.f32.mrf.mxu1  ;;  %vm1075_vm11 = vmor %vm1073_vm10, %vm1074_vm9  ;;  %v1094_v31 = vand.u32 2147483648, %v1025_v7  ;;  %v1092_v33 = vand.u32 2147483647, %v1025_v7 }
 0x284   : > { %1280 = vst.msk [vmem:[%s2036_s17 + $0x8] sm:$0xff] %vm1278_vm3, %v1066_v10  ;;  %v1070_v17 = vsub.f32 1.0, %v1069_v9  ;;  %v942_v18 = vadd.f32 %v2025_v24, %v941_v11  ;;  %vm1088_vm14 = vweird.f32 %v1025_v7 }
 0x285   : > { %v1095_v39 = vor.u32 1.1754944e-38, %v1094_v31  ;;  %vm1093_vm0 = vcmp.eq.f32.partialorder %v1092_v33, 8.507059e+37 }
 0x286   : > { %v1071_v13 = vmul.f32 %v1511_v4, %v1070_v17  ;;  %v979_v15 = vsub.f32 0.0, %v942_v18 }
 0x288   : > { %v1513_v16 = vpop.eup %1512  ;;  %v1072_v19 = vadd.f32 %v1511_v4, %v1071_v13  ;;  %v1000_v20 = vmul.f32 1.442695, %v979_v15 }
 0x289   : > { %v1515_v21 = vpop.eup %1514  ;;  %v1026_v23 = vadd.f32 1.0, %v1513_v16 }
 0x28a   : > { %v1076_v25 = vsel %vm1075_vm11, %v1511_v4, %v1072_v19  ;;  %v1084_v26 = vmul.f32 %v1515_v21, %v1025_v7  ;;  %1516 = vpow2.f32 %v1000_v20  ;;  %vm1089_vm13 = vweird.f32 %v1515_v21 }
 0x28b   : > { %v1081_v27 = vsel %vm1078_vm12, %v1080_v22, %v1076_v25  ;;  %1518 = vrcp.f32 %v1026_v23  ;;  %v944_v28 = vpop.f32.mrf.mxu1  ;;  %vm1090_vm15 = vmor %vm1088_vm14, %vm1089_vm13  ;;  %v1109_v47 = vand.u32 2147483648, %v1026_v23  ;;  %v1107_v5 = vand.u32 2147483647, %v1026_v23 }
 0x28c   : > { %1281 = vst.msk [vmem:[%s2036_s17 + $0x10] sm:$0xff] %vm1278_vm3, %v1081_v27  ;;  %v1085_v29 = vsub.f32 1.0, %v1084_v26  ;;  %v945_v30 = vadd.f32 %v2025_v24, %v944_v28  ;;  %vm1103_vm2 = vweird.f32 %v1026_v23 }
 0x28d   : > { %v1110_v54 = vor.u32 1.1754944e-38, %v1109_v47  ;;  %vm1108_vm5 = vcmp.eq.f32.partialorder %v1107_v5, 8.507059e+37 }
 0x28e   : > { %v1086_v32 = vmul.f32 %v1515_v21, %v1085_v29  ;;  %v980_v34 = vsub.f32 0.0, %v945_v30 }
 0x290   : > { %v1517_v35 = vpop.eup %1516  ;;  %v1087_v36 = vadd.f32 %v1515_v21, %v1086_v32  ;;  %v1002_v37 = vmul.f32 1.442695, %v980_v34 }
 0x291   : > { %v1519_v38 = vpop.eup %1518  ;;  %v1027_v40 = vadd.f32 1.0, %v1517_v35 }
 0x292   : > { %v1091_v41 = vsel %vm1090_vm15, %v1515_v21, %v1087_v36  ;;  %v1099_v42 = vmul.f32 %v1519_v38, %v1026_v23  ;;  %1520 = vpow2.f32 %v1002_v37  ;;  %vm1104_vm1 = vweird.f32 %v1519_v38 }
 0x293   : > { %v1096_v43 = vsel %vm1093_vm0, %v1095_v39, %v1091_v41  ;;  %1522 = vrcp.f32 %v1027_v40  ;;  %v947_v44 = vpop.f32.mrf.mxu1  ;;  %vm1105_vm4 = vmor %vm1103_vm2, %vm1104_vm1  ;;  %v1124_v62 = vand.u32 2147483648, %v1027_v40  ;;  %v1122_v0 = vand.u32 2147483647, %v1027_v40 }
 0x294   : > { %1282 = vst.msk [vmem:[%s2036_s17 + $0x18] sm:$0xff] %vm1278_vm3, %v1096_v43  ;;  %v1100_v45 = vsub.f32 1.0, %v1099_v42  ;;  %v948_v46 = vadd.f32 %v2025_v24, %v947_v44  ;;  %vm1118_vm7 = vweird.f32 %v1027_v40 }
 0x295   : > { %v1125_v7 = vor.u32 1.1754944e-38, %v1124_v62  ;;  %vm1123_vm9 = vcmp.eq.f32.partialorder %v1122_v0, 8.507059e+37 }
 0x296   : > { %v1101_v48 = vmul.f32 %v1519_v38, %v1100_v45  ;;  %v981_v49 = vsub.f32 0.0, %v948_v46 }
 0x298   : > { %v1521_v50 = vpop.eup %1520  ;;  %v1102_v51 = vadd.f32 %v1519_v38, %v1101_v48  ;;  %v1004_v52 = vmul.f32 1.442695, %v981_v49 }
 0x299   : > { %v1523_v53 = vpop.eup %1522  ;;  %v1028_v55 = vadd.f32 1.0, %v1521_v50 }
 0x29a   : > { %v1106_v56 = vsel %vm1105_vm4, %v1519_v38, %v1102_v51  ;;  %v1114_v57 = vmul.f32 %v1523_v53, %v1027_v40  ;;  %1524 = vpow2.f32 %v1004_v52  ;;  %vm1119_vm6 = vweird.f32 %v1523_v53 }
 0x29b   : > { %v1111_v58 = vsel %vm1108_vm5, %v1110_v54, %v1106_v56  ;;  %1526 = vrcp.f32 %v1028_v55  ;;  %v950_v59 = vpop.f32.mrf.mxu1  ;;  %vm1120_vm8 = vmor %vm1118_vm7, %vm1119_vm6  ;;  %v1139_v13 = vand.u32 2147483648, %v1028_v55  ;;  %v1137_v15 = vand.u32 2147483647, %v1028_v55 }
 0x29c   : > { %1283 = vst.msk [vmem:[%s2036_s17 + $0x20] sm:$0xff] %vm1278_vm3, %v1111_v58  ;;  %v1115_v60 = vsub.f32 1.0, %v1114_v57  ;;  %v951_v61 = vadd.f32 %v2025_v24, %v950_v59  ;;  %vm1133_vm11 = vweird.f32 %v1028_v55 }
 0x29d   : > { %v1140_v23 = vor.u32 1.1754944e-38, %v1139_v13  ;;  %vm1138_vm13 = vcmp.eq.f32.partialorder %v1137_v15, 8.507059e+37 }
 0x29e   : > { %v1116_v63 = vmul.f32 %v1523_v53, %v1115_v60  ;;  %v982_v1 = vsub.f32 0.0, %v951_v61 }
 0x2a0   : > { %v1525_v2 = vpop.eup %1524  ;;  %v1117_v3 = vadd.f32 %v1523_v53, %v1116_v63  ;;  %v1006_v4 = vmul.f32 1.442695, %v982_v1 }
 0x2a1   : > { %v1527_v6 = vpop.eup %1526  ;;  %v1029_v8 = vadd.f32 1.0, %v1525_v2 }
 0x2a2   : > { %v1121_v9 = vsel %vm1120_vm8, %v1523_v53, %v1117_v3  ;;  %v1129_v10 = vmul.f32 %v1527_v6, %v1028_v55  ;;  %1528 = vpow2.f32 %v1006_v4  ;;  %vm1134_vm10 = vweird.f32 %v1527_v6 }
 0x2a3   : > { %v1126_v11 = vsel %vm1123_vm9, %v1125_v7, %v1121_v9  ;;  %1530 = vrcp.f32 %v1029_v8  ;;  %v953_v17 = vpop.f32.mrf.mxu1  ;;  %vm1135_vm12 = vmor %vm1133_vm11, %vm1134_vm10  ;;  %v1154_v32 = vand.u32 2147483648, %v1029_v8  ;;  %v1152_v34 = vand.u32 2147483647, %v1029_v8 }
 0x2a4   : > { %1284 = vst.msk [vmem:[%s2036_s17 + $0x28] sm:$0xff] %vm1278_vm3, %v1126_v11  ;;  %v1130_v18 = vsub.f32 1.0, %v1129_v10  ;;  %v954_v12 = vadd.f32 %v2025_v24, %v953_v17  ;;  %vm1148_vm15 = vweird.f32 %v1029_v8 }
 0x2a5   : > { %v1155_v40 = vor.u32 1.1754944e-38, %v1154_v32  ;;  %vm1153_vm1 = vcmp.eq.f32.partialorder %v1152_v34, 8.507059e+37 }
 0x2a6   : > { %v1131_v14 = vmul.f32 %v1527_v6, %v1130_v18  ;;  %v983_v16 = vsub.f32 0.0, %v954_v12 }
 0x2a8   : > { %v1529_v19 = vpop.eup %1528  ;;  %v1132_v20 = vadd.f32 %v1527_v6, %v1131_v14  ;;  %v1008_v21 = vmul.f32 1.442695, %v983_v16 }
 0x2a9   : > { %v1531_v22 = vpop.eup %1530  ;;  %v1030_v25 = vadd.f32 1.0, %v1529_v19 }
 0x2aa   : > { %v1136_v26 = vsel %vm1135_vm12, %v1527_v6, %v1132_v20  ;;  %v1144_v27 = vmul.f32 %v1531_v22, %v1029_v8  ;;  %1532 = vpow2.f32 %v1008_v21  ;;  %vm1149_vm14 = vweird.f32 %v1531_v22 }
 0x2ab   : > { %v1141_v28 = vsel %vm1138_vm13, %v1140_v23, %v1136_v26  ;;  %1534 = vrcp.f32 %v1030_v25  ;;  %v956_v29 = vpop.f32.mrf.mxu1  ;;  %vm1150_vm0 = vmor %vm1148_vm15, %vm1149_vm14  ;;  %v1169_v48 = vand.u32 2147483648, %v1030_v25  ;;  %v1167_v49 = vand.u32 2147483647, %v1030_v25 }
 0x2ac   : > { %1285 = vst.msk [vmem:[%s2036_s17 + $0x30] sm:$0xff] %vm1278_vm3, %v1141_v28  ;;  %v1145_v30 = vsub.f32 1.0, %v1144_v27  ;;  %v957_v31 = vadd.f32 %v2025_v24, %v956_v29  ;;  %vm1163_vm4 = vweird.f32 %v1030_v25 }
 0x2ad   : > { %v1170_v55 = vor.u32 1.1754944e-38, %v1169_v48  ;;  %vm1168_vm6 = vcmp.eq.f32.partialorder %v1167_v49, 8.507059e+37 }
 0x2ae   : > { %v1146_v33 = vmul.f32 %v1531_v22, %v1145_v30  ;;  %v984_v35 = vsub.f32 0.0, %v957_v31 }
 0x2b0   : > { %v1533_v36 = vpop.eup %1532  ;;  %v1147_v37 = vadd.f32 %v1531_v22, %v1146_v33  ;;  %v1010_v38 = vmul.f32 1.442695, %v984_v35 }
 0x2b1   : > { %v1535_v39 = vpop.eup %1534  ;;  %v1031_v41 = vadd.f32 1.0, %v1533_v36 }
 0x2b2   : > { %v1151_v42 = vsel %vm1150_vm0, %v1531_v22, %v1147_v37  ;;  %v1159_v43 = vmul.f32 %v1535_v39, %v1030_v25  ;;  %1536 = vpow2.f32 %v1010_v38  ;;  %vm1164_vm2 = vweird.f32 %v1535_v39 }
 0x2b3   : > { %v1156_v44 = vsel %vm1153_vm1, %v1155_v40, %v1151_v42  ;;  %1538 = vrcp.f32 %v1031_v41  ;;  %v959_v45 = vpop.f32.mrf.mxu1  ;;  %vm1165_vm5 = vmor %vm1163_vm4, %vm1164_vm2  ;;  %v1184_v63 = vand.u32 2147483648, %v1031_v41  ;;  %v1182_v1 = vand.u32 2147483647, %v1031_v41 }
 0x2b4   : > { %1286 = vst.msk [vmem:[%s2036_s17 + $0x38] sm:$0xff] %vm1278_vm3, %v1156_v44  ;;  %v1160_v46 = vsub.f32 1.0, %v1159_v43  ;;  %v960_v47 = vadd.f32 %v2025_v24, %v959_v45  ;;  %vm1178_vm8 = vweird.f32 %v1031_v41 }
 0x2b5   : > { %v1185_v8 = vor.u32 1.1754944e-38, %v1184_v63  ;;  %vm1183_vm10 = vcmp.eq.f32.partialorder %v1182_v1, 8.507059e+37 }
 0x2b6   : > { %v1161_v5 = vmul.f32 %v1535_v39, %v1160_v46  ;;  %v985_v50 = vsub.f32 0.0, %v960_v47 }
 0x2b8   : > { %v1537_v51 = vpop.eup %1536  ;;  %v1162_v52 = vadd.f32 %v1535_v39, %v1161_v5  ;;  %v1012_v53 = vmul.f32 1.442695, %v985_v50 }
 0x2b9   : > { %v1539_v54 = vpop.eup %1538  ;;  %v1032_v56 = vadd.f32 1.0, %v1537_v51 }
 0x2ba   : > { %v1166_v57 = vsel %vm1165_vm5, %v1535_v39, %v1162_v52  ;;  %v1174_v58 = vmul.f32 %v1539_v54, %v1031_v41  ;;  %1540 = vpow2.f32 %v1012_v53  ;;  %vm1179_vm7 = vweird.f32 %v1539_v54 }
 0x2bb   : > { %v1171_v59 = vsel %vm1168_vm6, %v1170_v55, %v1166_v57  ;;  %1542 = vrcp.f32 %v1032_v56  ;;  %v962_v60 = vpop.f32.mrf.mxu1  ;;  %vm1180_vm9 = vmor %vm1178_vm8, %vm1179_vm7  ;;  %v1199_v14 = vand.u32 2147483648, %v1032_v56  ;;  %v1197_v16 = vand.u32 2147483647, %v1032_v56 }
 0x2bc   : > { %1287 = vst.msk [vmem:[%s2036_s17 + $0x40] sm:$0xff] %vm1278_vm3, %v1171_v59  ;;  %v1175_v61 = vsub.f32 1.0, %v1174_v58  ;;  %v963_v62 = vadd.f32 %v2025_v24, %v962_v60  ;;  %vm1193_vm12 = vweird.f32 %v1032_v56 }
 0x2bd   : > { %v1200_v25 = vor.u32 1.1754944e-38, %v1199_v14  ;;  %vm1198_vm14 = vcmp.eq.f32.partialorder %v1197_v16, 8.507059e+37 }
 0x2be   : > { %v1176_v0 = vmul.f32 %v1539_v54, %v1175_v61  ;;  %v986_v2 = vsub.f32 0.0, %v963_v62 }
 0x2c0   : > { %v1541_v3 = vpop.eup %1540  ;;  %v1177_v4 = vadd.f32 %v1539_v54, %v1176_v0  ;;  %v1014_v6 = vmul.f32 1.442695, %v986_v2 }
 0x2c1   : > { %v1543_v7 = vpop.eup %1542  ;;  %v1033_v9 = vadd.f32 1.0, %v1541_v3 }
 0x2c2   : > { %v1181_v10 = vsel %vm1180_vm9, %v1539_v54, %v1177_v4  ;;  %v1189_v11 = vmul.f32 %v1543_v7, %v1032_v56  ;;  %1544 = vpow2.f32 %v1014_v6  ;;  %vm1194_vm11 = vweird.f32 %v1543_v7 }
 0x2c3   : > { %v1186_v17 = vsel %vm1183_vm10, %v1185_v8, %v1181_v10  ;;  %1546 = vrcp.f32 %v1033_v9  ;;  %v965_v18 = vpop.f32.mrf.mxu1  ;;  %vm1195_vm13 = vmor %vm1193_vm12, %vm1194_vm11  ;;  %v1214_v33 = vand.u32 2147483648, %v1033_v9  ;;  %v1212_v35 = vand.u32 2147483647, %v1033_v9 }
 0x2c4   : > { %1288 = vst.msk [vmem:[%s2036_s17 + $0x48] sm:$0xff] %vm1278_vm3, %v1186_v17  ;;  %v1190_v12 = vsub.f32 1.0, %v1189_v11  ;;  %v966_v13 = vadd.f32 %v2025_v24, %v965_v18  ;;  %vm1208_vm0 = vweird.f32 %v1033_v9 }
 0x2c5   : > { %v1215_v41 = vor.u32 1.1754944e-38, %v1214_v33  ;;  %vm1213_vm2 = vcmp.eq.f32.partialorder %v1212_v35, 8.507059e+37 }
 0x2c6   : > { %v1191_v15 = vmul.f32 %v1543_v7, %v1190_v12  ;;  %v987_v19 = vsub.f32 0.0, %v966_v13 }
 0x2c8   : > { %v1545_v20 = vpop.eup %1544  ;;  %v1192_v21 = vadd.f32 %v1543_v7, %v1191_v15  ;;  %v1016_v22 = vmul.f32 1.442695, %v987_v19 }
 0x2c9   : > { %v1547_v23 = vpop.eup %1546  ;;  %v1034_v26 = vadd.f32 1.0, %v1545_v20 }
 0x2ca   : > { %v1196_v27 = vsel %vm1195_vm13, %v1543_v7, %v1192_v21  ;;  %v1204_v28 = vmul.f32 %v1547_v23, %v1033_v9  ;;  %1548 = vpow2.f32 %v1016_v22  ;;  %vm1209_vm15 = vweird.f32 %v1547_v23 }
 0x2cb   : > { %v1201_v29 = vsel %vm1198_vm14, %v1200_v25, %v1196_v27  ;;  %1550 = vrcp.f32 %v1034_v26  ;;  %v968_v30 = vpop.f32.mrf.mxu1  ;;  %vm1210_vm1 = vmor %vm1208_vm0, %vm1209_vm15  ;;  %v1229_v5 = vand.u32 2147483648, %v1034_v26  ;;  %v1227_v50 = vand.u32 2147483647, %v1034_v26 }
 0x2cc   : > { %1289 = vst.msk [vmem:[%s2036_s17 + $0x50] sm:$0xff] %vm1278_vm3, %v1201_v29  ;;  %v1205_v31 = vsub.f32 1.0, %v1204_v28  ;;  %v969_v32 = vadd.f32 %v2025_v24, %v968_v30  ;;  %vm1223_vm5 = vweird.f32 %v1034_v26 }
 0x2cd   : > { %v1230_v56 = vor.u32 1.1754944e-38, %v1229_v5  ;;  %vm1228_vm7 = vcmp.eq.f32.partialorder %v1227_v50, 8.507059e+37 }
 0x2ce   : > { %v1206_v34 = vmul.f32 %v1547_v23, %v1205_v31  ;;  %v988_v36 = vsub.f32 0.0, %v969_v32 }
 0x2d0   : > { %v1549_v37 = vpop.eup %1548  ;;  %v1207_v38 = vadd.f32 %v1547_v23, %v1206_v34  ;;  %v1018_v39 = vmul.f32 1.442695, %v988_v36 }
 0x2d1   : > { %v1551_v40 = vpop.eup %1550  ;;  %v1035_v42 = vadd.f32 1.0, %v1549_v37 }
 0x2d2   : > { %v1211_v43 = vsel %vm1210_vm1, %v1547_v23, %v1207_v38  ;;  %v1219_v44 = vmul.f32 %v1551_v40, %v1034_v26  ;;  %1552 = vpow2.f32 %v1018_v39  ;;  %vm1224_vm4 = vweird.f32 %v1551_v40 }
 0x2d3   : > { %v1216_v45 = vsel %vm1213_vm2, %v1215_v41, %v1211_v43  ;;  %1554 = vrcp.f32 %v1035_v42  ;;  %v971_v46 = vpop.f32.mrf.mxu1  ;;  %vm1225_vm6 = vmor %vm1223_vm5, %vm1224_vm4  ;;  %v1244_v61 = vand.u32 2147483648, %v1035_v42  ;;  %v1242_v63 = vand.u32 2147483647, %v1035_v42 }
 0x2d4   : > { %1290 = vst.msk [vmem:[%s2036_s17 + $0x58] sm:$0xff] %vm1278_vm3, %v1216_v45  ;;  %v1220_v47 = vsub.f32 1.0, %v1219_v44  ;;  %v972_v48 = vadd.f32 %v2025_v24, %v971_v46  ;;  %vm1238_vm9 = vweird.f32 %v1035_v42 }
 0x2d5   : > { %v1245_v3 = vor.u32 1.1754944e-38, %v1244_v61  ;;  %vm1243_vm11 = vcmp.eq.f32.partialorder %v1242_v63, 8.507059e+37 }
 0x2d6   : > { %v1221_v49 = vmul.f32 %v1551_v40, %v1220_v47  ;;  %v989_v51 = vsub.f32 0.0, %v972_v48 }
 0x2d8   : > { %v1553_v52 = vpop.eup %1552  ;;  %v1222_v53 = vadd.f32 %v1551_v40, %v1221_v49  ;;  %v1020_v54 = vmul.f32 1.442695, %v989_v51 }
 0x2d9   : > { %v1555_v55 = vpop.eup %1554  ;;  %v1036_v57 = vadd.f32 1.0, %v1553_v52 }
 0x2da   : > { %v1226_v58 = vsel %vm1225_vm6, %v1551_v40, %v1222_v53  ;;  %v1234_v59 = vmul.f32 %v1555_v55, %v1035_v42  ;;  %1556 = vpow2.f32 %v1020_v54  ;;  %vm1239_vm8 = vweird.f32 %v1555_v55 }
 0x2db   : > { %v1231_v60 = vsel %vm1228_vm7, %v1230_v56, %v1226_v58  ;;  %1558 = vrcp.f32 %v1036_v57  ;;  %vm1240_vm10 = vmor %vm1238_vm9, %vm1239_vm8  ;;  %v1259_v10 = vand.u32 2147483648, %v1036_v57  ;;  %v1257_v17 = vand.u32 2147483647, %v1036_v57 }
 0x2dc   : > { %1291 = vst.msk [vmem:[%s2036_s17 + $0x60] sm:$0xff] %vm1278_vm3, %v1231_v60  ;;  %v1235_v24 = vsub.f32 1.0, %v1234_v59  ;;  %vm1253_vm13 = vweird.f32 %v1036_v57 }
 0x2dd   : > { %v1260_v13 = vor.u32 1.1754944e-38, %v1259_v10  ;;  %vm1258_vm15 = vcmp.eq.f32.partialorder %v1257_v17, 8.507059e+37 }
 0x2de   : > { %v1236_v62 = vmul.f32 %v1555_v55, %v1235_v24 }
 0x2e0   : > { %v1557_v0 = vpop.eup %1556  ;;  %v1237_v1 = vadd.f32 %v1555_v55, %v1236_v62 }
 0x2e1   : > { %v1559_v2 = vpop.eup %1558  ;;  %v1037_v4 = vadd.f32 1.0, %v1557_v0 }
 0x2e2   : > { %v1241_v6 = vsel %vm1240_vm10, %v1555_v55, %v1237_v1  ;;  %v1249_v7 = vmul.f32 %v1559_v2, %v1036_v57  ;;  %vm1254_vm12 = vweird.f32 %v1559_v2 }
 0x2e3   : > { %v1246_v8 = vsel %vm1243_vm11, %v1245_v3, %v1241_v6  ;;  %1560 = vrcp.f32 %v1037_v4  ;;  %vm1255_vm14 = vmor %vm1253_vm13, %vm1254_vm12  ;;  %v1274_v20 = vand.u32 2147483648, %v1037_v4  ;;  %v1272_v22 = vand.u32 2147483647, %v1037_v4 }
 0x2e4   : > { %1292 = vst.msk [vmem:[%s2036_s17 + $0x68] sm:$0xff] %vm1278_vm3, %v1246_v8  ;;  %v1250_v9 = vsub.f32 1.0, %v1249_v7  ;;  %vm1268_vm1 = vweird.f32 %v1037_v4 }
 0x2e5   : > { %v1275_v25 = vor.u32 1.1754944e-38, %v1274_v20  ;;  %vm1273_vm4 = vcmp.eq.f32.partialorder %v1272_v22, 8.507059e+37 }
 0x2e6   : > { %v1251_v11 = vmul.f32 %v1559_v2, %v1250_v9 }
 0x2e8   : > { %v1252_v18 = vadd.f32 %v1559_v2, %v1251_v11 }
 0x2e9   : > { %v1561_v12 = vpop.eup %1560 }
 0x2ea   : > { %v1256_v14 = vsel %vm1255_vm14, %v1559_v2, %v1252_v18  ;;  %v1264_v15 = vmul.f32 %v1561_v12, %v1037_v4  ;;  %vm1269_vm0 = vweird.f32 %v1561_v12 }
 0x2eb   : > { %v1261_v16 = vsel %vm1258_vm15, %v1260_v13, %v1256_v14  ;;  %vm1270_vm2 = vmor %vm1268_vm1, %vm1269_vm0 }
 0x2ec   : > { %1293 = vst.msk [vmem:[%s2036_s17 + $0x70] sm:$0xff] %vm1278_vm3, %v1261_v16  ;;  %v1265_v19 = vsub.f32 1.0, %v1264_v15 }
 0x2ee   : > { %v1266_v21 = vmul.f32 %v1561_v12, %v1265_v19 }
 0x2f0   : > { %v1267_v23 = vadd.f32 %v1561_v12, %v1266_v21 }
 0x2f2   : > { %v1271_v26 = vsel %vm1270_vm2, %v1561_v12, %v1267_v23 }
 0x2f3   : > { %v1276_v27 = vsel %vm1273_vm4, %v1275_v25, %v1271_v26 }
 0x2f4   : > { %1294 = vst.msk [vmem:[%s2036_s17 + $0x78] sm:$0xff] %vm1278_vm3, %v1276_v27 }
 0x2f5 PF: > { %p20_p4 = scmp.ge.s32.totalorder %s1800_s16, 4   ;;  %s2117_s30 = smov %s1682_s10 }
 0x2f6   : > { %s2118_s10 = smov %s1686_s11  ;;  %s2119_s11 = smov %s1809_s18 }
 0x2f7   : > { %s2120_s12 = smov %s1800_s16  ;;  %22 = sbr.rel (!%p20_p4) target bundleno = 6 (0x6), region = 104 }
 0x2fc   :  { %1317 = vsyncpa [#allocation3], 1 }
 0x2fd   :  { %1319 = vsyncpa [#allocation3 + $0x1], 1 }
 0x2fe   :  { %1320 = vsyncpa [#allocation5], 1 }

</bundles_post_ra>
